<compile_context>
chip_gen: v6e
topology: v6e:2x2x1
jax: 0.10.0
libtpu: 0.0.40
codegen_flags: <defaults>
</compile_context>

<pallas_src>
import functools

import jax
import jax.numpy as jnp
from jax import lax
from jax.experimental import pallas as pl
from jax.experimental.pallas import tpu as pltpu

VMEM_SPEC = pl.BlockSpec(memory_space=pltpu.MemorySpace.VMEM)
COMPILER_PARAMS = pltpu.CompilerParams(vmem_limit_bytes=32 * 1024 * 1024)


# ---------------------------------------------------------------------------
# In-kernel helpers
# ---------------------------------------------------------------------------
def _dot(a, b):
    return jnp.dot(a, b, preferred_element_type=jnp.float32)


def _log_softmax_last(x):
    m = jnp.max(x, axis=-1, keepdims=True)
    s = x - m
    return s - jnp.log(jnp.sum(jnp.exp(s), axis=-1, keepdims=True))


def _onehot_argmax(x):
    """First-occurrence argmax one-hot over axis 1 (torch.max index semantics)."""
    iota = lax.broadcasted_iota(jnp.int32, x.shape, 1)
    masked = jnp.where(x == jnp.max(x, axis=1, keepdims=True), iota, x.shape[1])
    idx = jnp.min(masked, axis=1, keepdims=True)
    return (iota == idx).astype(jnp.float32)


def _gru(gih, gh, bhn, hx, H):
    """Fused-gate GRU update.

    gih: input-side pre-activations (B, 3H) with b_ih folded (and b_hh folded
         for the r/z gates);  gh: h @ W_hh_fused (no bias);  bhn: b_hh_n.
    """
    rz = jax.nn.sigmoid(gih[:, :2 * H] + gh[:, :2 * H])
    r = rz[:, :H]
    u = rz[:, H:]
    n = jnp.tanh(gih[:, 2 * H:] + r * (gh[:, 2 * H:] + bhn))
    return (1.0 - u) * n + u * hx


def _unroll(T):
    return True if T <= 32 else 8


# ---------------------------------------------------------------------------
# Kernel 1: bidirectional GRU encoder + linear mu/var + reparameterization
# ---------------------------------------------------------------------------
def _encoder_kernel(xc_ref,                                      # (T*B, Din)  bf16
                    wif_ref, whf_ref, bf_ref, bfn_ref,
                    wib_ref, whb_ref, bb_ref, bbn_ref,
                    wmu_f_ref, wmu_b_ref, bmu_ref,
                    wvar_f_ref, wvar_b_ref, bvar_ref,
                    noise_ref,                                   # (B, Z)
                    mu_ref, std_ref, z_ref,                      # outputs (B, Z)
                    gif_ref, gib_ref,                            # scratch (T*B, 3H)
                    *, T, B, H):
    # ---- hoisted input projections: one big bf16 MXU matmul per direction ----
    xc = xc_ref[...]
    gif_ref[...] = _dot(xc, wif_ref[...]) + bf_ref[...]     # biases folded (r/z: ih+hh)
    gib_ref[...] = _dot(xc, wib_ref[...]) + bb_ref[...]

    whf = whf_ref[...]
    whb = whb_ref[...]
    bfn = bfn_ref[...]
    bbn = bbn_ref[...]
    h0 = jnp.zeros((B, H), jnp.float32)

    def body(t, carry):
        hf, hb = carry
        rf = pl.multiple_of(t * B, B)
        rb = pl.multiple_of((T - 1 - t) * B, B)
        # forward + backward chains are independent -> scheduler interleaves them
        hf = _gru(gif_ref[pl.ds(rf, B), :], _dot(hf, whf), bfn, hf, H)
        hb = _gru(gib_ref[pl.ds(rb, B), :], _dot(hb, whb), bbn, hb, H)
        return hf, hb

    hf, hb = lax.fori_loop(0, T, body, (h0, h0), unroll=_unroll(T))

    mu = _dot(hf, wmu_f_ref[...]) + _dot(hb, wmu_b_ref[...]) + bmu_ref[...]
    logv = _dot(hf, wvar_f_ref[...]) + _dot(hb, wvar_b_ref[...]) + bvar_ref[...]
    std = jnp.exp(logv)          # reference: Normal(mu, linear_var(x).exp())
    mu_ref[...] = mu
    std_ref[...] = std
    z_ref[...] = mu + std * noise_ref[...]   # rsample


# ---------------------------------------------------------------------------
# Kernel 2: fused rhythm + final decoder (autoregressive, argmax feedback),
#           skew-interleaved by one step.
# ---------------------------------------------------------------------------
def _decoder_kernel(z1_ref, z2_ref, cond_ref,                    # (B,Z1),(B,Z2),(T*B,C)
                    wi0_ref, bi0_ref,                            # linear_init_0
                    wfb0_ref, wz0_ref,                           # gc0 W_ih split [out | z2]
                    whh0_ref, b0_ref, b0hn_ref,                  # gc0 W_hh + folded biases
                    wout0_ref, bout0_ref,                        # linear_out_0
                    wi1_ref, bi1_ref,                            # linear_init_1
                    wfb1_ref, wrhy_ref, wz1_ref, wc_ref,         # gc1 W_ih split
                    whh1_ref, b1_ref, b1hn_ref,                  # gc1 W_hh + folded biases
                    wih2_ref, whh2_ref, b2_ref, b2hn_ref,        # gc2
                    wout1_ref, bout1_ref,                        # linear_out_1
                    rhy_ref, roll_ref,                           # outputs (T*B,R),(T*B,ROLL)
                    ext_ref,                                     # scratch (T*B, 3H)
                    *, T, B, H, R, ROLL):
    z1 = z1_ref[...]
    z2 = z2_ref[...]

    # ---- hoisted, step-independent projections ----
    hxr0 = jnp.tanh(_dot(z2, wi0_ref[...]) + bi0_ref[...])
    gz0 = _dot(z2, wz0_ref[...]) + b0_ref[...]                   # (B, 3H), biases folded
    hxf0 = jnp.tanh(_dot(z1, wi1_ref[...]) + bi1_ref[...])
    gz1 = _dot(z1, wz1_ref[...]) + b1_ref[...]                   # (B, 3H)
    ext_ref[...] = _dot(cond_ref[...], wc_ref[...])              # (T*B, 3H), bf16 matmul

    wfb0 = wfb0_ref[...]
    whh0 = whh0_ref[...]
    b0hn = b0hn_ref[...]
    wout0 = wout0_ref[...]
    bout0 = bout0_ref[...]
    wfb1 = wfb1_ref[...]
    wrhy = wrhy_ref[...]
    whh1 = whh1_ref[...]
    b1hn = b1hn_ref[...]
    wih2 = wih2_ref[...]
    whh2 = whh2_ref[...]
    b2 = b2_ref[...]
    b2hn = b2hn_ref[...]
    wout1 = wout1_ref[...]
    bout1 = bout1_ref[...]

    colr = lax.broadcasted_iota(jnp.int32, (B, R), 1)
    out_r0 = (colr == (R - 1)).astype(jnp.float32)               # zeros, last col = 1
    colf = lax.broadcasted_iota(jnp.int32, (B, ROLL), 1)
    out_f0 = (colf == (ROLL - 1)).astype(jnp.float32)

    def rhythm_step(t_row, out_oh, hx):
        gih = _dot(out_oh, wfb0) + gz0                           # fused 3H matmul
        gh = _dot(hx, whh0)                                      # fused 3H matmul
        hx = _gru(gih, gh, b0hn, hx, H)
        ls = _log_softmax_last(_dot(hx, wout0) + bout0)          # needed by final decoder
        rhy_ref[pl.ds(t_row, B), :] = ls
        return _onehot_argmax(ls), hx, ls

    def final_step(t_row, out_oh, rhy_ls, hx0, hx1, first=False):
        gih = (_dot(out_oh, wfb1) + _dot(rhy_ls, wrhy)
               + ext_ref[pl.ds(t_row, B), :] + gz1)
        gh = _dot(hx0, whh1)
        hx0 = _gru(gih, gh, b1hn, hx0, H)
        if first:                                                # i == 0: hx[1] = hx[0]
            hx1 = hx0
        gih2 = _dot(hx0, wih2) + b2
        gh2 = _dot(hx1, whh2)
        hx1 = _gru(gih2, gh2, b2hn, hx1, H)
        logits = _dot(hx1, wout1) + bout1
        roll_ref[pl.ds(t_row, B), :] = logits                    # raw; batched softmax later
        return _onehot_argmax(logits), hx0, hx1                  # argmax invariant

    # ---- prologue: rhythm step 0 ----
    out_r, hxr, ls_prev = rhythm_step(0, out_r0, hxr0)

    if T == 1:
        final_step(0, out_f0, ls_prev, hxf0, hxf0, first=True)
    else:
        # peeled iteration t=1: rhythm step 1 || final step 0 (hx1-init quirk)
        out_r, hxr, ls_new = rhythm_step(B, out_r, hxr)
        out_f, hx0f, hx1f = final_step(0, out_f0, ls_prev, hxf0, hxf0, first=True)
        ls_prev = ls_new

        if T > 2:
            def body(t, carry):
                o_r, h_r, ls_p, o_f, h0c, h1c = carry
                row_r = pl.multiple_of(t * B, B)
                row_f = pl.multiple_of((t - 1) * B, B)
                # rhythm step t and final step t-1 are independent -> overlap
                n_o_r, n_h_r, ls_n = rhythm_step(row_r, o_r, h_r)
                n_o_f, n_h0, n_h1 = final_step(row_f, o_f, ls_p, h0c, h1c)
                return n_o_r, n_h_r, ls_n, n_o_f, n_h0, n_h1

            out_r, hxr, ls_prev, out_f, hx0f, hx1f = lax.fori_loop(
                2, T, body, (out_r, hxr, ls_prev, out_f, hx0f, hx1f),
                unroll=_unroll(T))

        # epilogue: final step T-1 consumes the last rhythm log_softmax
        final_step((T - 1) * B, out_f, ls_prev, hx0f, hx1f)

    roll_ref[...] = _log_softmax_last(roll_ref[...])             # one batched pass


# ---------------------------------------------------------------------------
# Parameter init (deterministic, PyTorch shapes)
# ---------------------------------------------------------------------------
def init_params(key, roll, hidden, rhythm, cond, z1, z2):
    names_shapes = [
        ("gru0_wif", (3 * hidden, roll + cond)), ("gru0_whf", (3 * hidden, hidden)),
        ("gru0_bif", (3 * hidden,)), ("gru0_bhf", (3 * hidden,)),
        ("gru0_wib", (3 * hidden, roll + cond)), ("gru0_whb", (3 * hidden, hidden)),
        ("gru0_bib", (3 * hidden,)), ("gru0_bhb", (3 * hidden,)),
        ("mu_w", (z1 + z2, 2 * hidden)), ("mu_b", (z1 + z2,)),
        ("var_w", (z1 + z2, 2 * hidden)), ("var_b", (z1 + z2,)),
        ("gc0_wih", (3 * hidden, z2 + rhythm)), ("gc0_whh", (3 * hidden, hidden)),
        ("gc0_bih", (3 * hidden,)), ("gc0_bhh", (3 * hidden,)),
        ("gc1_wih", (3 * hidden, z1 + roll + rhythm + cond)), ("gc1_whh", (3 * hidden, hidden)),
        ("gc1_bih", (3 * hidden,)), ("gc1_bhh", (3 * hidden,)),
        ("gc2_wih", (3 * hidden, hidden)), ("gc2_whh", (3 * hidden, hidden)),
        ("gc2_bih", (3 * hidden,)), ("gc2_bhh", (3 * hidden,)),
        ("init0_w", (hidden, z2)), ("init0_b", (hidden,)),
        ("out0_w", (rhythm, hidden)), ("out0_b", (rhythm,)),
        ("init1_w", (hidden, z1)), ("init1_b", (hidden,)),
        ("out1_w", (roll, hidden)), ("out1_b", (roll,)),
    ]
    keys = jax.random.split(key, len(names_shapes))
    return {name: jax.random.normal(k, shape, jnp.float32) * 0.1
            for (name, shape), k in zip(names_shapes, keys)}


# ---------------------------------------------------------------------------
# Wrapper-side parameter plumbing
# ---------------------------------------------------------------------------
def _t(w):
    return jnp.transpose(w)


def _row(b):
    return b.reshape(1, -1)


def _comb_bias(bih, bhh, H):
    """Fold biases: (1,3H) with b_ih+b_hh for r,z and b_ih for n; plus (1,H) b_hh_n."""
    main = jnp.concatenate([bih[:2 * H] + bhh[:2 * H], bih[2 * H:]]).reshape(1, -1)
    return main, bhh[2 * H:].reshape(1, -1)


# ---------------------------------------------------------------------------
# Forward wrapper (plain-JAX glue + two pallas_calls)
# ---------------------------------------------------------------------------
def forward(params, x, condition, rng_key, *,
            roll, hidden, rhythm, cond, z1d, z2d, n_step):
    B, T, _ = x.shape
    Z = z1d + z2d
    H = hidden

    # ---- pad batch up to the 8-sublane tile so per-step slices are unmasked ----
    Bp = ((B + 7) // 8) * 8
    pad = Bp - B
    if pad:
        x_p = jnp.pad(x, ((0, pad), (0, 0), (0, 0)))
        cond_p = jnp.pad(condition, ((0, pad), (0, 0), (0, 0)))
    else:
        x_p, cond_p = x, condition

    # ---- encoder ----
    xc = jnp.concatenate([x_p, cond_p], axis=-1)                       # (Bp,T,Din)
    xc2d = jnp.transpose(xc, (1, 0, 2)).reshape(T * Bp, roll + cond)   # time-major flat
    xc2d = xc2d.astype(jnp.bfloat16)                                   # bf16 MXU operand
    noise = jax.random.normal(rng_key, (B, Z), jnp.float32)
    noise_p = jnp.pad(noise, ((0, pad), (0, 0))) if pad else noise

    wif_b = _t(params["gru0_wif"]).astype(jnp.bfloat16)
    wib_b = _t(params["gru0_wib"]).astype(jnp.bfloat16)
    whf_t = _t(params["gru0_whf"])
    whb_t = _t(params["gru0_whb"])
    bf_main, bf_hn = _comb_bias(params["gru0_bif"], params["gru0_bhf"], H)
    bb_main, bb_hn = _comb_bias(params["gru0_bib"], params["gru0_bhb"], H)
    wmu_t = _t(params["mu_w"])      # (2H, Z)
    wvar_t = _t(params["var_w"])

    enc_args = (xc2d,
                wif_b, whf_t, bf_main, bf_hn,
                wib_b, whb_t, bb_main, bb_hn,
                wmu_t[:H], wmu_t[H:], _row(params["mu_b"]),
                wvar_t[:H], wvar_t[H:], _row(params["var_b"]),
                noise_p)
    mu_p, std_p, z_p = pl.pallas_call(
        functools.partial(_encoder_kernel, T=T, B=Bp, H=H),
        out_shape=(jax.ShapeDtypeStruct((Bp, Z), jnp.float32),) * 3,
        in_specs=[VMEM_SPEC] * len(enc_args),
        out_specs=(VMEM_SPEC,) * 3,
        scratch_shapes=[pltpu.VMEM((T * Bp, 3 * H), jnp.float32)] * 2,
        compiler_params=COMPILER_PARAMS,
    )(*enc_args)

    z1_p = z_p[:, :z1d]
    z2_p = z_p[:, z1d:]

    # ---- fused rhythm + final decoder ----
    cond2d = jnp.transpose(cond_p[:, :n_step], (1, 0, 2)).reshape(n_step * Bp, cond)
    cond2d = cond2d.astype(jnp.bfloat16)

    gc0_wih_t = _t(params["gc0_wih"])              # rows = [out(rhythm) | z2]
    wfb0 = gc0_wih_t[:rhythm]
    wz0 = gc0_wih_t[rhythm:]
    whh0_t = _t(params["gc0_whh"])
    b0_main, b0_hn = _comb_bias(params["gc0_bih"], params["gc0_bhh"], H)

    gc1_wih_t = _t(params["gc1_wih"])              # rows = [out(roll) | rhythm | z1 | cond]
    s0, s1, s2 = roll, roll + rhythm, roll + rhythm + z1d
    wfb1 = gc1_wih_t[:s0]
    wrhy = gc1_wih_t[s0:s1]
    wz1 = gc1_wih_t[s1:s2]
    wc_b = gc1_wih_t[s2:].astype(jnp.bfloat16)
    whh1_t = _t(params["gc1_whh"])
    b1_main, b1_hn = _comb_bias(params["gc1_bih"], params["gc1_bhh"], H)
    wih2_t = _t(params["gc2_wih"])
    whh2_t = _t(params["gc2_whh"])
    b2_main, b2_hn = _comb_bias(params["gc2_bih"], params["gc2_bhh"], H)

    dec_args = (z1_p, z2_p, cond2d,
                _t(params["init0_w"]), _row(params["init0_b"]),
                wfb0, wz0, whh0_t, b0_main, b0_hn,
                _t(params["out0_w"]), _row(params["out0_b"]),
                _t(params["init1_w"]), _row(params["init1_b"]),
                wfb1, wrhy, wz1, wc_b,
                whh1_t, b1_main, b1_hn,
                wih2_t, whh2_t, b2_main, b2_hn,
                _t(params["out1_w"]), _row(params["out1_b"]))
    rhy2d, roll2d = pl.pallas_call(
        functools.partial(_decoder_kernel, T=n_step, B=Bp, H=H, R=rhythm, ROLL=roll),
        out_shape=(jax.ShapeDtypeStruct((n_step * Bp, rhythm), jnp.float32),
                   jax.ShapeDtypeStruct((n_step * Bp, roll), jnp.float32)),
        in_specs=[VMEM_SPEC] * len(dec_args),
        out_specs=(VMEM_SPEC, VMEM_SPEC),
        scratch_shapes=[pltpu.VMEM((n_step * Bp, 3 * H), jnp.float32)],
        compiler_params=COMPILER_PARAMS,
    )(*dec_args)

    recon = jnp.transpose(roll2d.reshape(n_step, Bp, roll), (1, 0, 2))[:B]
    recon_rhythm = jnp.transpose(rhy2d.reshape(n_step, Bp, rhythm), (1, 0, 2))[:B]
    mu = mu_p[:B]
    std = std_p[:B]
    z1 = z_p[:B, :z1d]
    z2 = z_p[:B, z1d:]

    return (recon, recon_rhythm,
            mu[:, :z1d], std[:, :z1d],
            mu[:, z1d:], std[:, z1d:],
            z1, z2)


# ---------------------------------------------------------------------------
if __name__ == "__main__":
    B, T = 2, 8
    ROLL, HID, RHY, COND, Z1, Z2 = 16, 32, 4, 8, 8, 8

    pkey, xkey, ckey, nkey = jax.random.split(jax.random.PRNGKey(0), 4)
    params = init_params(pkey, ROLL, HID, RHY, COND, Z1, Z2)

    # x: one-hot piano-roll-like input; condition: dense features.
    x = jax.nn.one_hot(jax.random.randint(xkey, (B, T), 0, ROLL), ROLL,
                       dtype=jnp.float32)
    condition = jax.random.normal(ckey, (B, T, COND), jnp.float32)

    outs = forward(params, x, condition, nkey,
                   roll=ROLL, hidden=HID, rhythm=RHY, cond=COND,
                   z1d=Z1, z2d=Z2, n_step=T)
    outs = jax.block_until_ready(outs)

    recon, recon_rhythm, mu1, std1, mu2, std2, z1, z2 = outs
    assert recon.shape == (B, T, ROLL)
    assert recon_rhythm.shape == (B, T, RHY)
    assert mu1.shape == (B, Z1) and std1.shape == (B, Z1)
    assert mu2.shape == (B, Z2) and std2.shape == (B, Z2)
    assert z1.shape == (B, Z1) and z2.shape == (B, Z2)
    assert bool(jnp.all(jnp.isfinite(recon))) and bool(jnp.all(jnp.isfinite(recon_rhythm)))
    # log-softmax rows must (approximately) exponentiate-sum to 1
    assert bool(jnp.all(jnp.abs(jnp.sum(jnp.exp(recon), -1) - 1.0) < 1e-3))
    assert bool(jnp.all(jnp.abs(jnp.sum(jnp.exp(recon_rhythm), -1) - 1.0) < 1e-3))
    print("KERNEL_OK")
</pallas_src>

<mosaic_0001>
module attributes {stable_mosaic.version = 11 : i64} {
  func.func @_encoder_kernel(%arg0: memref<64x24xbf16, #tpu.memory_space<vmem>>, %arg1: memref<24x96xbf16, #tpu.memory_space<vmem>>, %arg2: memref<32x96xf32, #tpu.memory_space<vmem>>, %arg3: memref<1x96xf32, #tpu.memory_space<vmem>>, %arg4: memref<1x32xf32, #tpu.memory_space<vmem>>, %arg5: memref<24x96xbf16, #tpu.memory_space<vmem>>, %arg6: memref<32x96xf32, #tpu.memory_space<vmem>>, %arg7: memref<1x96xf32, #tpu.memory_space<vmem>>, %arg8: memref<1x32xf32, #tpu.memory_space<vmem>>, %arg9: memref<32x16xf32, #tpu.memory_space<vmem>>, %arg10: memref<32x16xf32, #tpu.memory_space<vmem>>, %arg11: memref<1x16xf32, #tpu.memory_space<vmem>>, %arg12: memref<32x16xf32, #tpu.memory_space<vmem>>, %arg13: memref<32x16xf32, #tpu.memory_space<vmem>>, %arg14: memref<1x16xf32, #tpu.memory_space<vmem>>, %arg15: memref<8x16xf32, #tpu.memory_space<vmem>>, %arg16: memref<8x16xf32, #tpu.memory_space<vmem>>, %arg17: memref<8x16xf32, #tpu.memory_space<vmem>>, %arg18: memref<8x16xf32, #tpu.memory_space<vmem>>, %arg19: memref<64x96xf32, #tpu.memory_space<vmem>>, %arg20: memref<64x96xf32, #tpu.memory_space<vmem>>) attributes {dimension_semantics = [], scalar_prefetch = 0 : i64, scratch_operands = 2 : i64, tpu.core_type = #tpu.core_type<tc>} {
    %c0 = arith.constant 0 : index
    %c0_0 = arith.constant 0 : index
    %0 = vector.load %arg0[%c0, %c0_0] : memref<64x24xbf16, #tpu.memory_space<vmem>>, vector<64x24xbf16>
    %c0_1 = arith.constant 0 : index
    %c0_2 = arith.constant 0 : index
    %1 = vector.load %arg1[%c0_1, %c0_2] : memref<24x96xbf16, #tpu.memory_space<vmem>>, vector<24x96xbf16>
    %cst = arith.constant dense<0.000000e+00> : vector<64x96xf32>
    %2 = tpu.matmul %0, %1, %cst {dimension_numbers = #tpu.dot_dimension_numbers<[1], [0], [0], [1], [0, 0, 1, 1], [], []>} : vector<64x24xbf16>, vector<24x96xbf16>, vector<64x96xf32> -> vector<64x96xf32>
    %c0_3 = arith.constant 0 : index
    %c0_4 = arith.constant 0 : index
    %3 = vector.load %arg3[%c0_3, %c0_4] : memref<1x96xf32, #tpu.memory_space<vmem>>, vector<1x96xf32>
    %4 = vector.broadcast %3 : vector<1x96xf32> to vector<64x96xf32>
    %5 = arith.addf %2, %4 : vector<64x96xf32>
    %c0_5 = arith.constant 0 : index
    %c0_6 = arith.constant 0 : index
    %6 = vector.load %arg19[%c0_5, %c0_6] : memref<64x96xf32, #tpu.memory_space<vmem>>, vector<64x96xf32>
    tpu.vector_store %arg19[%c0_5, %c0_6], %5 {strides = array<i32>} : memref<64x96xf32, #tpu.memory_space<vmem>>, vector<64x96xf32>,
    %c0_7 = arith.constant 0 : index
    %c0_8 = arith.constant 0 : index
    %7 = vector.load %arg5[%c0_7, %c0_8] : memref<24x96xbf16, #tpu.memory_space<vmem>>, vector<24x96xbf16>
    %cst_9 = arith.constant dense<0.000000e+00> : vector<64x96xf32>
    %8 = tpu.matmul %0, %7, %cst_9 {dimension_numbers = #tpu.dot_dimension_numbers<[1], [0], [0], [1], [0, 0, 1, 1], [], []>} : vector<64x24xbf16>, vector<24x96xbf16>, vector<64x96xf32> -> vector<64x96xf32>
    %c0_10 = arith.constant 0 : index
    %c0_11 = arith.constant 0 : index
    %9 = vector.load %arg7[%c0_10, %c0_11] : memref<1x96xf32, #tpu.memory_space<vmem>>, vector<1x96xf32>
    %10 = vector.broadcast %9 : vector<1x96xf32> to vector<64x96xf32>
    %11 = arith.addf %8, %10 : vector<64x96xf32>
    %c0_12 = arith.constant 0 : index
    %c0_13 = arith.constant 0 : index
    %12 = vector.load %arg20[%c0_12, %c0_13] : memref<64x96xf32, #tpu.memory_space<vmem>>, vector<64x96xf32>
    tpu.vector_store %arg20[%c0_12, %c0_13], %11 {strides = array<i32>} : memref<64x96xf32, #tpu.memory_space<vmem>>, vector<64x96xf32>,
    %c0_14 = arith.constant 0 : index
    %c0_15 = arith.constant 0 : index
    %13 = vector.load %arg2[%c0_14, %c0_15] : memref<32x96xf32, #tpu.memory_space<vmem>>, vector<32x96xf32>
    %c0_16 = arith.constant 0 : index
    %c0_17 = arith.constant 0 : index
    %14 = vector.load %arg6[%c0_16, %c0_17] : memref<32x96xf32, #tpu.memory_space<vmem>>, vector<32x96xf32>
    %c0_18 = arith.constant 0 : index
    %c0_19 = arith.constant 0 : index
    %15 = vector.load %arg4[%c0_18, %c0_19] : memref<1x32xf32, #tpu.memory_space<vmem>>, vector<1x32xf32>
    %c0_20 = arith.constant 0 : index
    %c0_21 = arith.constant 0 : index
    %16 = vector.load %arg8[%c0_20, %c0_21] : memref<1x32xf32, #tpu.memory_space<vmem>>, vector<1x32xf32>
    %cst_22 = arith.constant 0.000000e+00 : f32
    %17 = vector.broadcast %cst_22 : f32 to vector<8x32xf32>
    %c0_i32 = arith.constant 0 : i32
    %c8_i32 = arith.constant 8 : i32
    %18 = arith.muli %c0_i32, %c8_i32 : i32
    %19 = tpu.assume_multiple %18, 8 : i32
    %c7_i32 = arith.constant 7 : i32
    %20 = arith.subi %c7_i32, %c0_i32 : i32
    %c8_i32_23 = arith.constant 8 : i32
    %21 = arith.muli %20, %c8_i32_23 : i32
    %22 = tpu.assume_multiple %21, 8 : i32
    %23 = arith.index_cast %19 : i32 to index
    %c0_24 = arith.constant 0 : index
    %24 = vector.load %arg19[%23, %c0_24] : memref<64x96xf32, #tpu.memory_space<vmem>>, vector<8x96xf32>
    %cst_25 = arith.constant dense<0.000000e+00> : vector<8x96xf32>
    %25 = tpu.matmul %17, %13, %cst_25 {dimension_numbers = #tpu.dot_dimension_numbers<[1], [0], [0], [1], [0, 0, 1, 1], [], []>} : vector<8x32xf32>, vector<32x96xf32>, vector<8x96xf32> -> vector<8x96xf32>
    %26 = vector.extract_strided_slice %24 {offsets = [0, 0], sizes = [8, 64], strides = [1, 1]} : vector<8x96xf32> to vector<8x64xf32>
    %27 = vector.extract_strided_slice %25 {offsets = [0, 0], sizes = [8, 64], strides = [1, 1]} : vector<8x96xf32> to vector<8x64xf32>
    %28 = arith.addf %26, %27 : vector<8x64xf32>
    %29 = arith.negf %28 : vector<8x64xf32>
    %30 = math.exp %29 : vector<8x64xf32>
    %cst_26 = arith.constant 1.000000e+00 : f32
    %31 = vector.broadcast %cst_26 : f32 to vector<8x64xf32>
    %32 = arith.addf %31, %30 : vector<8x64xf32>
    %33 = arith.divf %31, %32 : vector<8x64xf32>
    %34 = vector.extract_strided_slice %33 {offsets = [0, 0], sizes = [8, 32], strides = [1, 1]} : vector<8x64xf32> to vector<8x32xf32>
    %35 = vector.extract_strided_slice %33 {offsets = [0, 32], sizes = [8, 32], strides = [1, 1]} : vector<8x64xf32> to vector<8x32xf32>
    %36 = vector.extract_strided_slice %24 {offsets = [0, 64], sizes = [8, 32], strides = [1, 1]} : vector<8x96xf32> to vector<8x32xf32>
    %37 = vector.extract_strided_slice %25 {offsets = [0, 64], sizes = [8, 32], strides = [1, 1]} : vector<8x96xf32> to vector<8x32xf32>
    %38 = vector.broadcast %15 : vector<1x32xf32> to vector<8x32xf32>
    %39 = arith.addf %37, %38 : vector<8x32xf32>
    %40 = arith.mulf %34, %39 : vector<8x32xf32>
    %41 = arith.addf %36, %40 : vector<8x32xf32>
    %42 = math.tanh %41 : vector<8x32xf32>
    %cst_27 = arith.constant 1.000000e+00 : f32
    %43 = vector.broadcast %cst_27 : f32 to vector<8x32xf32>
    %44 = arith.subf %43, %35 : vector<8x32xf32>
    %45 = arith.mulf %44, %42 : vector<8x32xf32>
    %46 = arith.mulf %35, %17 : vector<8x32xf32>
    %47 = arith.addf %45, %46 : vector<8x32xf32>
    %48 = arith.index_cast %22 : i32 to index
    %c0_28 = arith.constant 0 : index
    %49 = vector.load %arg20[%48, %c0_28] : memref<64x96xf32, #tpu.memory_space<vmem>>, vector<8x96xf32>
    %cst_29 = arith.constant dense<0.000000e+00> : vector<8x96xf32>
    %50 = tpu.matmul %17, %14, %cst_29 {dimension_numbers = #tpu.dot_dimension_numbers<[1], [0], [0], [1], [0, 0, 1, 1], [], []>} : vector<8x32xf32>, vector<32x96xf32>, vector<8x96xf32> -> vector<8x96xf32>
    %51 = vector.extract_strided_slice %49 {offsets = [0, 0], sizes = [8, 64], strides = [1, 1]} : vector<8x96xf32> to vector<8x64xf32>
    %52 = vector.extract_strided_slice %50 {offsets = [0, 0], sizes = [8, 64], strides = [1, 1]} : vector<8x96xf32> to vector<8x64xf32>
    %53 = arith.addf %51, %52 : vector<8x64xf32>
    %54 = arith.negf %53 : vector<8x64xf32>
    %55 = math.exp %54 : vector<8x64xf32>
    %cst_30 = arith.constant 1.000000e+00 : f32
    %56 = vector.broadcast %cst_30 : f32 to vector<8x64xf32>
    %57 = arith.addf %56, %55 : vector<8x64xf32>
    %58 = arith.divf %56, %57 : vector<8x64xf32>
    %59 = vector.extract_strided_slice %58 {offsets = [0, 0], sizes = [8, 32], strides = [1, 1]} : vector<8x64xf32> to vector<8x32xf32>
    %60 = vector.extract_strided_slice %58 {offsets = [0, 32], sizes = [8, 32], strides = [1, 1]} : vector<8x64xf32> to vector<8x32xf32>
    %61 = vector.extract_strided_slice %49 {offsets = [0, 64], sizes = [8, 32], strides = [1, 1]} : vector<8x96xf32> to vector<8x32xf32>
    %62 = vector.extract_strided_slice %50 {offsets = [0, 64], sizes = [8, 32], strides = [1, 1]} : vector<8x96xf32> to vector<8x32xf32>
    %63 = vector.broadcast %16 : vector<1x32xf32> to vector<8x32xf32>
    %64 = arith.addf %62, %63 : vector<8x32xf32>
    %65 = arith.mulf %59, %64 : vector<8x32xf32>
    %66 = arith.addf %61, %65 : vector<8x32xf32>
    %67 = math.tanh %66 : vector<8x32xf32>
    %cst_31 = arith.constant 1.000000e+00 : f32
    %68 = vector.broadcast %cst_31 : f32 to vector<8x32xf32>
    %69 = arith.subf %68, %60 : vector<8x32xf32>
    %70 = arith.mulf %69, %67 : vector<8x32xf32>
    %71 = arith.mulf %60, %17 : vector<8x32xf32>
    %72 = arith.addf %70, %71 : vector<8x32xf32>
    %c1_i32 = arith.constant 1 : i32
    %c8_i32_32 = arith.constant 8 : i32
    %73 = arith.muli %c1_i32, %c8_i32_32 : i32
    %74 = tpu.assume_multiple %73, 8 : i32
    %c7_i32_33 = arith.constant 7 : i32
    %75 = arith.subi %c7_i32_33, %c1_i32 : i32
    %c8_i32_34 = arith.constant 8 : i32
    %76 = arith.muli %75, %c8_i32_34 : i32
    %77 = tpu.assume_multiple %76, 8 : i32
    %78 = arith.index_cast %74 : i32 to index
    %c0_35 = arith.constant 0 : index
    %79 = vector.load %arg19[%78, %c0_35] : memref<64x96xf32, #tpu.memory_space<vmem>>, vector<8x96xf32>
    %cst_36 = arith.constant dense<0.000000e+00> : vector<8x96xf32>
    %80 = tpu.matmul %47, %13, %cst_36 {dimension_numbers = #tpu.dot_dimension_numbers<[1], [0], [0], [1], [0, 0, 1, 1], [], []>} : vector<8x32xf32>, vector<32x96xf32>, vector<8x96xf32> -> vector<8x96xf32>
    %81 = vector.extract_strided_slice %79 {offsets = [0, 0], sizes = [8, 64], strides = [1, 1]} : vector<8x96xf32> to vector<8x64xf32>
    %82 = vector.extract_strided_slice %80 {offsets = [0, 0], sizes = [8, 64], strides = [1, 1]} : vector<8x96xf32> to vector<8x64xf32>
    %83 = arith.addf %81, %82 : vector<8x64xf32>
    %84 = arith.negf %83 : vector<8x64xf32>
    %85 = math.exp %84 : vector<8x64xf32>
    %cst_37 = arith.constant 1.000000e+00 : f32
    %86 = vector.broadcast %cst_37 : f32 to vector<8x64xf32>
    %87 = arith.addf %86, %85 : vector<8x64xf32>
    %88 = arith.divf %86, %87 : vector<8x64xf32>
    %89 = vector.extract_strided_slice %88 {offsets = [0, 0], sizes = [8, 32], strides = [1, 1]} : vector<8x64xf32> to vector<8x32xf32>
    %90 = vector.extract_strided_slice %88 {offsets = [0, 32], sizes = [8, 32], strides = [1, 1]} : vector<8x64xf32> to vector<8x32xf32>
    %91 = vector.extract_strided_slice %79 {offsets = [0, 64], sizes = [8, 32], strides = [1, 1]} : vector<8x96xf32> to vector<8x32xf32>
    %92 = vector.extract_strided_slice %80 {offsets = [0, 64], sizes = [8, 32], strides = [1, 1]} : vector<8x96xf32> to vector<8x32xf32>
    %93 = vector.broadcast %15 : vector<1x32xf32> to vector<8x32xf32>
    %94 = arith.addf %92, %93 : vector<8x32xf32>
    %95 = arith.mulf %89, %94 : vector<8x32xf32>
    %96 = arith.addf %91, %95 : vector<8x32xf32>
    %97 = math.tanh %96 : vector<8x32xf32>
    %cst_38 = arith.constant 1.000000e+00 : f32
    %98 = vector.broadcast %cst_38 : f32 to vector<8x32xf32>
    %99 = arith.subf %98, %90 : vector<8x32xf32>
    %100 = arith.mulf %99, %97 : vector<8x32xf32>
    %101 = arith.mulf %90, %47 : vector<8x32xf32>
    %102 = arith.addf %100, %101 : vector<8x32xf32>
    %103 = arith.index_cast %77 : i32 to index
    %c0_39 = arith.constant 0 : index
    %104 = vector.load %arg20[%103, %c0_39] : memref<64x96xf32, #tpu.memory_space<vmem>>, vector<8x96xf32>
    %cst_40 = arith.constant dense<0.000000e+00> : vector<8x96xf32>
    %105 = tpu.matmul %72, %14, %cst_40 {dimension_numbers = #tpu.dot_dimension_numbers<[1], [0], [0], [1], [0, 0, 1, 1], [], []>} : vector<8x32xf32>, vector<32x96xf32>, vector<8x96xf32> -> vector<8x96xf32>
    %106 = vector.extract_strided_slice %104 {offsets = [0, 0], sizes = [8, 64], strides = [1, 1]} : vector<8x96xf32> to vector<8x64xf32>
    %107 = vector.extract_strided_slice %105 {offsets = [0, 0], sizes = [8, 64], strides = [1, 1]} : vector<8x96xf32> to vector<8x64xf32>
    %108 = arith.addf %106, %107 : vector<8x64xf32>
    %109 = arith.negf %108 : vector<8x64xf32>
    %110 = math.exp %109 : vector<8x64xf32>
    %cst_41 = arith.constant 1.000000e+00 : f32
    %111 = vector.broadcast %cst_41 : f32 to vector<8x64xf32>
    %112 = arith.addf %111, %110 : vector<8x64xf32>
    %113 = arith.divf %111, %112 : vector<8x64xf32>
    %114 = vector.extract_strided_slice %113 {offsets = [0, 0], sizes = [8, 32], strides = [1, 1]} : vector<8x64xf32> to vector<8x32xf32>
    %115 = vector.extract_strided_slice %113 {offsets = [0, 32], sizes = [8, 32], strides = [1, 1]} : vector<8x64xf32> to vector<8x32xf32>
    %116 = vector.extract_strided_slice %104 {offsets = [0, 64], sizes = [8, 32], strides = [1, 1]} : vector<8x96xf32> to vector<8x32xf32>
    %117 = vector.extract_strided_slice %105 {offsets = [0, 64], sizes = [8, 32], strides = [1, 1]} : vector<8x96xf32> to vector<8x32xf32>
    %118 = vector.broadcast %16 : vector<1x32xf32> to vector<8x32xf32>
    %119 = arith.addf %117, %118 : vector<8x32xf32>
    %120 = arith.mulf %114, %119 : vector<8x32xf32>
    %121 = arith.addf %116, %120 : vector<8x32xf32>
    %122 = math.tanh %121 : vector<8x32xf32>
    %cst_42 = arith.constant 1.000000e+00 : f32
    %123 = vector.broadcast %cst_42 : f32 to vector<8x32xf32>
    %124 = arith.subf %123, %115 : vector<8x32xf32>
    %125 = arith.mulf %124, %122 : vector<8x32xf32>
    %126 = arith.mulf %115, %72 : vector<8x32xf32>
    %127 = arith.addf %125, %126 : vector<8x32xf32>
    %c2_i32 = arith.constant 2 : i32
    %c8_i32_43 = arith.constant 8 : i32
    %128 = arith.muli %c2_i32, %c8_i32_43 : i32
    %129 = tpu.assume_multiple %128, 8 : i32
    %c7_i32_44 = arith.constant 7 : i32
    %130 = arith.subi %c7_i32_44, %c2_i32 : i32
    %c8_i32_45 = arith.constant 8 : i32
    %131 = arith.muli %130, %c8_i32_45 : i32
    %132 = tpu.assume_multiple %131, 8 : i32
    %133 = arith.index_cast %129 : i32 to index
    %c0_46 = arith.constant 0 : index
    %134 = vector.load %arg19[%133, %c0_46] : memref<64x96xf32, #tpu.memory_space<vmem>>, vector<8x96xf32>
    %cst_47 = arith.constant dense<0.000000e+00> : vector<8x96xf32>
    %135 = tpu.matmul %102, %13, %cst_47 {dimension_numbers = #tpu.dot_dimension_numbers<[1], [0], [0], [1], [0, 0, 1, 1], [], []>} : vector<8x32xf32>, vector<32x96xf32>, vector<8x96xf32> -> vector<8x96xf32>
    %136 = vector.extract_strided_slice %134 {offsets = [0, 0], sizes = [8, 64], strides = [1, 1]} : vector<8x96xf32> to vector<8x64xf32>
    %137 = vector.extract_strided_slice %135 {offsets = [0, 0], sizes = [8, 64], strides = [1, 1]} : vector<8x96xf32> to vector<8x64xf32>
    %138 = arith.addf %136, %137 : vector<8x64xf32>
    %139 = arith.negf %138 : vector<8x64xf32>
    %140 = math.exp %139 : vector<8x64xf32>
    %cst_48 = arith.constant 1.000000e+00 : f32
    %141 = vector.broadcast %cst_48 : f32 to vector<8x64xf32>
    %142 = arith.addf %141, %140 : vector<8x64xf32>
    %143 = arith.divf %141, %142 : vector<8x64xf32>
    %144 = vector.extract_strided_slice %143 {offsets = [0, 0], sizes = [8, 32], strides = [1, 1]} : vector<8x64xf32> to vector<8x32xf32>
    %145 = vector.extract_strided_slice %143 {offsets = [0, 32], sizes = [8, 32], strides = [1, 1]} : vector<8x64xf32> to vector<8x32xf32>
    %146 = vector.extract_strided_slice %134 {offsets = [0, 64], sizes = [8, 32], strides = [1, 1]} : vector<8x96xf32> to vector<8x32xf32>
    %147 = vector.extract_strided_slice %135 {offsets = [0, 64], sizes = [8, 32], strides = [1, 1]} : vector<8x96xf32> to vector<8x32xf32>
    %148 = vector.broadcast %15 : vector<1x32xf32> to vector<8x32xf32>
    %149 = arith.addf %147, %148 : vector<8x32xf32>
    %150 = arith.mulf %144, %149 : vector<8x32xf32>
    %151 = arith.addf %146, %150 : vector<8x32xf32>
    %152 = math.tanh %151 : vector<8x32xf32>
    %cst_49 = arith.constant 1.000000e+00 : f32
    %153 = vector.broadcast %cst_49 : f32 to vector<8x32xf32>
    %154 = arith.subf %153, %145 : vector<8x32xf32>
    %155 = arith.mulf %154, %152 : vector<8x32xf32>
    %156 = arith.mulf %145, %102 : vector<8x32xf32>
    %157 = arith.addf %155, %156 : vector<8x32xf32>
    %158 = arith.index_cast %132 : i32 to index
    %c0_50 = arith.constant 0 : index
    %159 = vector.load %arg20[%158, %c0_50] : memref<64x96xf32, #tpu.memory_space<vmem>>, vector<8x96xf32>
    %cst_51 = arith.constant dense<0.000000e+00> : vector<8x96xf32>
    %160 = tpu.matmul %127, %14, %cst_51 {dimension_numbers = #tpu.dot_dimension_numbers<[1], [0], [0], [1], [0, 0, 1, 1], [], []>} : vector<8x32xf32>, vector<32x96xf32>, vector<8x96xf32> -> vector<8x96xf32>
    %161 = vector.extract_strided_slice %159 {offsets = [0, 0], sizes = [8, 64], strides = [1, 1]} : vector<8x96xf32> to vector<8x64xf32>
    %162 = vector.extract_strided_slice %160 {offsets = [0, 0], sizes = [8, 64], strides = [1, 1]} : vector<8x96xf32> to vector<8x64xf32>
    %163 = arith.addf %161, %162 : vector<8x64xf32>
    %164 = arith.negf %163 : vector<8x64xf32>
    %165 = math.exp %164 : vector<8x64xf32>
    %cst_52 = arith.constant 1.000000e+00 : f32
    %166 = vector.broadcast %cst_52 : f32 to vector<8x64xf32>
    %167 = arith.addf %166, %165 : vector<8x64xf32>
    %168 = arith.divf %166, %167 : vector<8x64xf32>
    %169 = vector.extract_strided_slice %168 {offsets = [0, 0], sizes = [8, 32], strides = [1, 1]} : vector<8x64xf32> to vector<8x32xf32>
    %170 = vector.extract_strided_slice %168 {offsets = [0, 32], sizes = [8, 32], strides = [1, 1]} : vector<8x64xf32> to vector<8x32xf32>
    %171 = vector.extract_strided_slice %159 {offsets = [0, 64], sizes = [8, 32], strides = [1, 1]} : vector<8x96xf32> to vector<8x32xf32>
    %172 = vector.extract_strided_slice %160 {offsets = [0, 64], sizes = [8, 32], strides = [1, 1]} : vector<8x96xf32> to vector<8x32xf32>
    %173 = vector.broadcast %16 : vector<1x32xf32> to vector<8x32xf32>
    %174 = arith.addf %172, %173 : vector<8x32xf32>
    %175 = arith.mulf %169, %174 : vector<8x32xf32>
    %176 = arith.addf %171, %175 : vector<8x32xf32>
    %177 = math.tanh %176 : vector<8x32xf32>
    %cst_53 = arith.constant 1.000000e+00 : f32
    %178 = vector.broadcast %cst_53 : f32 to vector<8x32xf32>
    %179 = arith.subf %178, %170 : vector<8x32xf32>
    %180 = arith.mulf %179, %177 : vector<8x32xf32>
    %181 = arith.mulf %170, %127 : vector<8x32xf32>
    %182 = arith.addf %180, %181 : vector<8x32xf32>
    %c3_i32 = arith.constant 3 : i32
    %c8_i32_54 = arith.constant 8 : i32
    %183 = arith.muli %c3_i32, %c8_i32_54 : i32
    %184 = tpu.assume_multiple %183, 8 : i32
    %c7_i32_55 = arith.constant 7 : i32
    %185 = arith.subi %c7_i32_55, %c3_i32 : i32
    %c8_i32_56 = arith.constant 8 : i32
    %186 = arith.muli %185, %c8_i32_56 : i32
    %187 = tpu.assume_multiple %186, 8 : i32
    %188 = arith.index_cast %184 : i32 to index
    %c0_57 = arith.constant 0 : index
    %189 = vector.load %arg19[%188, %c0_57] : memref<64x96xf32, #tpu.memory_space<vmem>>, vector<8x96xf32>
    %cst_58 = arith.constant dense<0.000000e+00> : vector<8x96xf32>
    %190 = tpu.matmul %157, %13, %cst_58 {dimension_numbers = #tpu.dot_dimension_numbers<[1], [0], [0], [1], [0, 0, 1, 1], [], []>} : vector<8x32xf32>, vector<32x96xf32>, vector<8x96xf32> -> vector<8x96xf32>
    %191 = vector.extract_strided_slice %189 {offsets = [0, 0], sizes = [8, 64], strides = [1, 1]} : vector<8x96xf32> to vector<8x64xf32>
    %192 = vector.extract_strided_slice %190 {offsets = [0, 0], sizes = [8, 64], strides = [1, 1]} : vector<8x96xf32> to vector<8x64xf32>
    %193 = arith.addf %191, %192 : vector<8x64xf32>
    %194 = arith.negf %193 : vector<8x64xf32>
    %195 = math.exp %194 : vector<8x64xf32>
    %cst_59 = arith.constant 1.000000e+00 : f32
    %196 = vector.broadcast %cst_59 : f32 to vector<8x64xf32>
    %197 = arith.addf %196, %195 : vector<8x64xf32>
    %198 = arith.divf %196, %197 : vector<8x64xf32>
    %199 = vector.extract_strided_slice %198 {offsets = [0, 0], sizes = [8, 32], strides = [1, 1]} : vector<8x64xf32> to vector<8x32xf32>
    %200 = vector.extract_strided_slice %198 {offsets = [0, 32], sizes = [8, 32], strides = [1, 1]} : vector<8x64xf32> to vector<8x32xf32>
    %201 = vector.extract_strided_slice %189 {offsets = [0, 64], sizes = [8, 32], strides = [1, 1]} : vector<8x96xf32> to vector<8x32xf32>
    %202 = vector.extract_strided_slice %190 {offsets = [0, 64], sizes = [8, 32], strides = [1, 1]} : vector<8x96xf32> to vector<8x32xf32>
    %203 = vector.broadcast %15 : vector<1x32xf32> to vector<8x32xf32>
    %204 = arith.addf %202, %203 : vector<8x32xf32>
    %205 = arith.mulf %199, %204 : vector<8x32xf32>
    %206 = arith.addf %201, %205 : vector<8x32xf32>
    %207 = math.tanh %206 : vector<8x32xf32>
    %cst_60 = arith.constant 1.000000e+00 : f32
    %208 = vector.broadcast %cst_60 : f32 to vector<8x32xf32>
    %209 = arith.subf %208, %200 : vector<8x32xf32>
    %210 = arith.mulf %209, %207 : vector<8x32xf32>
    %211 = arith.mulf %200, %157 : vector<8x32xf32>
    %212 = arith.addf %210, %211 : vector<8x32xf32>
    %213 = arith.index_cast %187 : i32 to index
    %c0_61 = arith.constant 0 : index
    %214 = vector.load %arg20[%213, %c0_61] : memref<64x96xf32, #tpu.memory_space<vmem>>, vector<8x96xf32>
    %cst_62 = arith.constant dense<0.000000e+00> : vector<8x96xf32>
    %215 = tpu.matmul %182, %14, %cst_62 {dimension_numbers = #tpu.dot_dimension_numbers<[1], [0], [0], [1], [0, 0, 1, 1], [], []>} : vector<8x32xf32>, vector<32x96xf32>, vector<8x96xf32> -> vector<8x96xf32>
    %216 = vector.extract_strided_slice %214 {offsets = [0, 0], sizes = [8, 64], strides = [1, 1]} : vector<8x96xf32> to vector<8x64xf32>
    %217 = vector.extract_strided_slice %215 {offsets = [0, 0], sizes = [8, 64], strides = [1, 1]} : vector<8x96xf32> to vector<8x64xf32>
    %218 = arith.addf %216, %217 : vector<8x64xf32>
    %219 = arith.negf %218 : vector<8x64xf32>
    %220 = math.exp %219 : vector<8x64xf32>
    %cst_63 = arith.constant 1.000000e+00 : f32
    %221 = vector.broadcast %cst_63 : f32 to vector<8x64xf32>
    %222 = arith.addf %221, %220 : vector<8x64xf32>
    %223 = arith.divf %221, %222 : vector<8x64xf32>
    %224 = vector.extract_strided_slice %223 {offsets = [0, 0], sizes = [8, 32], strides = [1, 1]} : vector<8x64xf32> to vector<8x32xf32>
    %225 = vector.extract_strided_slice %223 {offsets = [0, 32], sizes = [8, 32], strides = [1, 1]} : vector<8x64xf32> to vector<8x32xf32>
    %226 = vector.extract_strided_slice %214 {offsets = [0, 64], sizes = [8, 32], strides = [1, 1]} : vector<8x96xf32> to vector<8x32xf32>
    %227 = vector.extract_strided_slice %215 {offsets = [0, 64], sizes = [8, 32], strides = [1, 1]} : vector<8x96xf32> to vector<8x32xf32>
    %228 = vector.broadcast %16 : vector<1x32xf32> to vector<8x32xf32>
    %229 = arith.addf %227, %228 : vector<8x32xf32>
    %230 = arith.mulf %224, %229 : vector<8x32xf32>
    %231 = arith.addf %226, %230 : vector<8x32xf32>
    %232 = math.tanh %231 : vector<8x32xf32>
    %cst_64 = arith.constant 1.000000e+00 : f32
    %233 = vector.broadcast %cst_64 : f32 to vector<8x32xf32>
    %234 = arith.subf %233, %225 : vector<8x32xf32>
    %235 = arith.mulf %234, %232 : vector<8x32xf32>
    %236 = arith.mulf %225, %182 : vector<8x32xf32>
    %237 = arith.addf %235, %236 : vector<8x32xf32>
    %c4_i32 = arith.constant 4 : i32
    %c8_i32_65 = arith.constant 8 : i32
    %238 = arith.muli %c4_i32, %c8_i32_65 : i32
    %239 = tpu.assume_multiple %238, 8 : i32
    %c7_i32_66 = arith.constant 7 : i32
    %240 = arith.subi %c7_i32_66, %c4_i32 : i32
    %c8_i32_67 = arith.constant 8 : i32
    %241 = arith.muli %240, %c8_i32_67 : i32
    %242 = tpu.assume_multiple %241, 8 : i32
    %243 = arith.index_cast %239 : i32 to index
    %c0_68 = arith.constant 0 : index
    %244 = vector.load %arg19[%243, %c0_68] : memref<64x96xf32, #tpu.memory_space<vmem>>, vector<8x96xf32>
    %cst_69 = arith.constant dense<0.000000e+00> : vector<8x96xf32>
    %245 = tpu.matmul %212, %13, %cst_69 {dimension_numbers = #tpu.dot_dimension_numbers<[1], [0], [0], [1], [0, 0, 1, 1], [], []>} : vector<8x32xf32>, vector<32x96xf32>, vector<8x96xf32> -> vector<8x96xf32>
    %246 = vector.extract_strided_slice %244 {offsets = [0, 0], sizes = [8, 64], strides = [1, 1]} : vector<8x96xf32> to vector<8x64xf32>
    %247 = vector.extract_strided_slice %245 {offsets = [0, 0], sizes = [8, 64], strides = [1, 1]} : vector<8x96xf32> to vector<8x64xf32>
    %248 = arith.addf %246, %247 : vector<8x64xf32>
    %249 = arith.negf %248 : vector<8x64xf32>
    %250 = math.exp %249 : vector<8x64xf32>
    %cst_70 = arith.constant 1.000000e+00 : f32
    %251 = vector.broadcast %cst_70 : f32 to vector<8x64xf32>
    %252 = arith.addf %251, %250 : vector<8x64xf32>
    %253 = arith.divf %251, %252 : vector<8x64xf32>
    %254 = vector.extract_strided_slice %253 {offsets = [0, 0], sizes = [8, 32], strides = [1, 1]} : vector<8x64xf32> to vector<8x32xf32>
    %255 = vector.extract_strided_slice %253 {offsets = [0, 32], sizes = [8, 32], strides = [1, 1]} : vector<8x64xf32> to vector<8x32xf32>
    %256 = vector.extract_strided_slice %244 {offsets = [0, 64], sizes = [8, 32], strides = [1, 1]} : vector<8x96xf32> to vector<8x32xf32>
    %257 = vector.extract_strided_slice %245 {offsets = [0, 64], sizes = [8, 32], strides = [1, 1]} : vector<8x96xf32> to vector<8x32xf32>
    %258 = vector.broadcast %15 : vector<1x32xf32> to vector<8x32xf32>
    %259 = arith.addf %257, %258 : vector<8x32xf32>
    %260 = arith.mulf %254, %259 : vector<8x32xf32>
    %261 = arith.addf %256, %260 : vector<8x32xf32>
    %262 = math.tanh %261 : vector<8x32xf32>
    %cst_71 = arith.constant 1.000000e+00 : f32
    %263 = vector.broadcast %cst_71 : f32 to vector<8x32xf32>
    %264 = arith.subf %263, %255 : vector<8x32xf32>
    %265 = arith.mulf %264, %262 : vector<8x32xf32>
    %266 = arith.mulf %255, %212 : vector<8x32xf32>
    %267 = arith.addf %265, %266 : vector<8x32xf32>
    %268 = arith.index_cast %242 : i32 to index
    %c0_72 = arith.constant 0 : index
    %269 = vector.load %arg20[%268, %c0_72] : memref<64x96xf32, #tpu.memory_space<vmem>>, vector<8x96xf32>
    %cst_73 = arith.constant dense<0.000000e+00> : vector<8x96xf32>
    %270 = tpu.matmul %237, %14, %cst_73 {dimension_numbers = #tpu.dot_dimension_numbers<[1], [0], [0], [1], [0, 0, 1, 1], [], []>} : vector<8x32xf32>, vector<32x96xf32>, vector<8x96xf32> -> vector<8x96xf32>
    %271 = vector.extract_strided_slice %269 {offsets = [0, 0], sizes = [8, 64], strides = [1, 1]} : vector<8x96xf32> to vector<8x64xf32>
    %272 = vector.extract_strided_slice %270 {offsets = [0, 0], sizes = [8, 64], strides = [1, 1]} : vector<8x96xf32> to vector<8x64xf32>
    %273 = arith.addf %271, %272 : vector<8x64xf32>
    %274 = arith.negf %273 : vector<8x64xf32>
    %275 = math.exp %274 : vector<8x64xf32>
    %cst_74 = arith.constant 1.000000e+00 : f32
    %276 = vector.broadcast %cst_74 : f32 to vector<8x64xf32>
    %277 = arith.addf %276, %275 : vector<8x64xf32>
    %278 = arith.divf %276, %277 : vector<8x64xf32>
    %279 = vector.extract_strided_slice %278 {offsets = [0, 0], sizes = [8, 32], strides = [1, 1]} : vector<8x64xf32> to vector<8x32xf32>
    %280 = vector.extract_strided_slice %278 {offsets = [0, 32], sizes = [8, 32], strides = [1, 1]} : vector<8x64xf32> to vector<8x32xf32>
    %281 = vector.extract_strided_slice %269 {offsets = [0, 64], sizes = [8, 32], strides = [1, 1]} : vector<8x96xf32> to vector<8x32xf32>
    %282 = vector.extract_strided_slice %270 {offsets = [0, 64], sizes = [8, 32], strides = [1, 1]} : vector<8x96xf32> to vector<8x32xf32>
    %283 = vector.broadcast %16 : vector<1x32xf32> to vector<8x32xf32>
    %284 = arith.addf %282, %283 : vector<8x32xf32>
    %285 = arith.mulf %279, %284 : vector<8x32xf32>
    %286 = arith.addf %281, %285 : vector<8x32xf32>
    %287 = math.tanh %286 : vector<8x32xf32>
    %cst_75 = arith.constant 1.000000e+00 : f32
    %288 = vector.broadcast %cst_75 : f32 to vector<8x32xf32>
    %289 = arith.subf %288, %280 : vector<8x32xf32>
    %290 = arith.mulf %289, %287 : vector<8x32xf32>
    %291 = arith.mulf %280, %237 : vector<8x32xf32>
    %292 = arith.addf %290, %291 : vector<8x32xf32>
    %c5_i32 = arith.constant 5 : i32
    %c8_i32_76 = arith.constant 8 : i32
    %293 = arith.muli %c5_i32, %c8_i32_76 : i32
    %294 = tpu.assume_multiple %293, 8 : i32
    %c7_i32_77 = arith.constant 7 : i32
    %295 = arith.subi %c7_i32_77, %c5_i32 : i32
    %c8_i32_78 = arith.constant 8 : i32
    %296 = arith.muli %295, %c8_i32_78 : i32
    %297 = tpu.assume_multiple %296, 8 : i32
    %298 = arith.index_cast %294 : i32 to index
    %c0_79 = arith.constant 0 : index
    %299 = vector.load %arg19[%298, %c0_79] : memref<64x96xf32, #tpu.memory_space<vmem>>, vector<8x96xf32>
    %cst_80 = arith.constant dense<0.000000e+00> : vector<8x96xf32>
    %300 = tpu.matmul %267, %13, %cst_80 {dimension_numbers = #tpu.dot_dimension_numbers<[1], [0], [0], [1], [0, 0, 1, 1], [], []>} : vector<8x32xf32>, vector<32x96xf32>, vector<8x96xf32> -> vector<8x96xf32>
    %301 = vector.extract_strided_slice %299 {offsets = [0, 0], sizes = [8, 64], strides = [1, 1]} : vector<8x96xf32> to vector<8x64xf32>
    %302 = vector.extract_strided_slice %300 {offsets = [0, 0], sizes = [8, 64], strides = [1, 1]} : vector<8x96xf32> to vector<8x64xf32>
    %303 = arith.addf %301, %302 : vector<8x64xf32>
    %304 = arith.negf %303 : vector<8x64xf32>
    %305 = math.exp %304 : vector<8x64xf32>
    %cst_81 = arith.constant 1.000000e+00 : f32
    %306 = vector.broadcast %cst_81 : f32 to vector<8x64xf32>
    %307 = arith.addf %306, %305 : vector<8x64xf32>
    %308 = arith.divf %306, %307 : vector<8x64xf32>
    %309 = vector.extract_strided_slice %308 {offsets = [0, 0], sizes = [8, 32], strides = [1, 1]} : vector<8x64xf32> to vector<8x32xf32>
    %310 = vector.extract_strided_slice %308 {offsets = [0, 32], sizes = [8, 32], strides = [1, 1]} : vector<8x64xf32> to vector<8x32xf32>
    %311 = vector.extract_strided_slice %299 {offsets = [0, 64], sizes = [8, 32], strides = [1, 1]} : vector<8x96xf32> to vector<8x32xf32>
    %312 = vector.extract_strided_slice %300 {offsets = [0, 64], sizes = [8, 32], strides = [1, 1]} : vector<8x96xf32> to vector<8x32xf32>
    %313 = vector.broadcast %15 : vector<1x32xf32> to vector<8x32xf32>
    %314 = arith.addf %312, %313 : vector<8x32xf32>
    %315 = arith.mulf %309, %314 : vector<8x32xf32>
    %316 = arith.addf %311, %315 : vector<8x32xf32>
    %317 = math.tanh %316 : vector<8x32xf32>
    %cst_82 = arith.constant 1.000000e+00 : f32
    %318 = vector.broadcast %cst_82 : f32 to vector<8x32xf32>
    %319 = arith.subf %318, %310 : vector<8x32xf32>
    %320 = arith.mulf %319, %317 : vector<8x32xf32>
    %321 = arith.mulf %310, %267 : vector<8x32xf32>
    %322 = arith.addf %320, %321 : vector<8x32xf32>
    %323 = arith.index_cast %297 : i32 to index
    %c0_83 = arith.constant 0 : index
    %324 = vector.load %arg20[%323, %c0_83] : memref<64x96xf32, #tpu.memory_space<vmem>>, vector<8x96xf32>
    %cst_84 = arith.constant dense<0.000000e+00> : vector<8x96xf32>
    %325 = tpu.matmul %292, %14, %cst_84 {dimension_numbers = #tpu.dot_dimension_numbers<[1], [0], [0], [1], [0, 0, 1, 1], [], []>} : vector<8x32xf32>, vector<32x96xf32>, vector<8x96xf32> -> vector<8x96xf32>
    %326 = vector.extract_strided_slice %324 {offsets = [0, 0], sizes = [8, 64], strides = [1, 1]} : vector<8x96xf32> to vector<8x64xf32>
    %327 = vector.extract_strided_slice %325 {offsets = [0, 0], sizes = [8, 64], strides = [1, 1]} : vector<8x96xf32> to vector<8x64xf32>
    %328 = arith.addf %326, %327 : vector<8x64xf32>
    %329 = arith.negf %328 : vector<8x64xf32>
    %330 = math.exp %329 : vector<8x64xf32>
    %cst_85 = arith.constant 1.000000e+00 : f32
    %331 = vector.broadcast %cst_85 : f32 to vector<8x64xf32>
    %332 = arith.addf %331, %330 : vector<8x64xf32>
    %333 = arith.divf %331, %332 : vector<8x64xf32>
    %334 = vector.extract_strided_slice %333 {offsets = [0, 0], sizes = [8, 32], strides = [1, 1]} : vector<8x64xf32> to vector<8x32xf32>
    %335 = vector.extract_strided_slice %333 {offsets = [0, 32], sizes = [8, 32], strides = [1, 1]} : vector<8x64xf32> to vector<8x32xf32>
    %336 = vector.extract_strided_slice %324 {offsets = [0, 64], sizes = [8, 32], strides = [1, 1]} : vector<8x96xf32> to vector<8x32xf32>
    %337 = vector.extract_strided_slice %325 {offsets = [0, 64], sizes = [8, 32], strides = [1, 1]} : vector<8x96xf32> to vector<8x32xf32>
    %338 = vector.broadcast %16 : vector<1x32xf32> to vector<8x32xf32>
    %339 = arith.addf %337, %338 : vector<8x32xf32>
    %340 = arith.mulf %334, %339 : vector<8x32xf32>
    %341 = arith.addf %336, %340 : vector<8x32xf32>
    %342 = math.tanh %341 : vector<8x32xf32>
    %cst_86 = arith.constant 1.000000e+00 : f32
    %343 = vector.broadcast %cst_86 : f32 to vector<8x32xf32>
    %344 = arith.subf %343, %335 : vector<8x32xf32>
    %345 = arith.mulf %344, %342 : vector<8x32xf32>
    %346 = arith.mulf %335, %292 : vector<8x32xf32>
    %347 = arith.addf %345, %346 : vector<8x32xf32>
    %c6_i32 = arith.constant 6 : i32
    %c8_i32_87 = arith.constant 8 : i32
    %348 = arith.muli %c6_i32, %c8_i32_87 : i32
    %349 = tpu.assume_multiple %348, 8 : i32
    %c7_i32_88 = arith.constant 7 : i32
    %350 = arith.subi %c7_i32_88, %c6_i32 : i32
    %c8_i32_89 = arith.constant 8 : i32
    %351 = arith.muli %350, %c8_i32_89 : i32
    %352 = tpu.assume_multiple %351, 8 : i32
    %353 = arith.index_cast %349 : i32 to index
    %c0_90 = arith.constant 0 : index
    %354 = vector.load %arg19[%353, %c0_90] : memref<64x96xf32, #tpu.memory_space<vmem>>, vector<8x96xf32>
    %cst_91 = arith.constant dense<0.000000e+00> : vector<8x96xf32>
    %355 = tpu.matmul %322, %13, %cst_91 {dimension_numbers = #tpu.dot_dimension_numbers<[1], [0], [0], [1], [0, 0, 1, 1], [], []>} : vector<8x32xf32>, vector<32x96xf32>, vector<8x96xf32> -> vector<8x96xf32>
    %356 = vector.extract_strided_slice %354 {offsets = [0, 0], sizes = [8, 64], strides = [1, 1]} : vector<8x96xf32> to vector<8x64xf32>
    %357 = vector.extract_strided_slice %355 {offsets = [0, 0], sizes = [8, 64], strides = [1, 1]} : vector<8x96xf32> to vector<8x64xf32>
    %358 = arith.addf %356, %357 : vector<8x64xf32>
    %359 = arith.negf %358 : vector<8x64xf32>
    %360 = math.exp %359 : vector<8x64xf32>
    %cst_92 = arith.constant 1.000000e+00 : f32
    %361 = vector.broadcast %cst_92 : f32 to vector<8x64xf32>
    %362 = arith.addf %361, %360 : vector<8x64xf32>
    %363 = arith.divf %361, %362 : vector<8x64xf32>
    %364 = vector.extract_strided_slice %363 {offsets = [0, 0], sizes = [8, 32], strides = [1, 1]} : vector<8x64xf32> to vector<8x32xf32>
    %365 = vector.extract_strided_slice %363 {offsets = [0, 32], sizes = [8, 32], strides = [1, 1]} : vector<8x64xf32> to vector<8x32xf32>
    %366 = vector.extract_strided_slice %354 {offsets = [0, 64], sizes = [8, 32], strides = [1, 1]} : vector<8x96xf32> to vector<8x32xf32>
    %367 = vector.extract_strided_slice %355 {offsets = [0, 64], sizes = [8, 32], strides = [1, 1]} : vector<8x96xf32> to vector<8x32xf32>
    %368 = vector.broadcast %15 : vector<1x32xf32> to vector<8x32xf32>
    %369 = arith.addf %367, %368 : vector<8x32xf32>
    %370 = arith.mulf %364, %369 : vector<8x32xf32>
    %371 = arith.addf %366, %370 : vector<8x32xf32>
    %372 = math.tanh %371 : vector<8x32xf32>
    %cst_93 = arith.constant 1.000000e+00 : f32
    %373 = vector.broadcast %cst_93 : f32 to vector<8x32xf32>
    %374 = arith.subf %373, %365 : vector<8x32xf32>
    %375 = arith.mulf %374, %372 : vector<8x32xf32>
    %376 = arith.mulf %365, %322 : vector<8x32xf32>
    %377 = arith.addf %375, %376 : vector<8x32xf32>
    %378 = arith.index_cast %352 : i32 to index
    %c0_94 = arith.constant 0 : index
    %379 = vector.load %arg20[%378, %c0_94] : memref<64x96xf32, #tpu.memory_space<vmem>>, vector<8x96xf32>
    %cst_95 = arith.constant dense<0.000000e+00> : vector<8x96xf32>
    %380 = tpu.matmul %347, %14, %cst_95 {dimension_numbers = #tpu.dot_dimension_numbers<[1], [0], [0], [1], [0, 0, 1, 1], [], []>} : vector<8x32xf32>, vector<32x96xf32>, vector<8x96xf32> -> vector<8x96xf32>
    %381 = vector.extract_strided_slice %379 {offsets = [0, 0], sizes = [8, 64], strides = [1, 1]} : vector<8x96xf32> to vector<8x64xf32>
    %382 = vector.extract_strided_slice %380 {offsets = [0, 0], sizes = [8, 64], strides = [1, 1]} : vector<8x96xf32> to vector<8x64xf32>
    %383 = arith.addf %381, %382 : vector<8x64xf32>
    %384 = arith.negf %383 : vector<8x64xf32>
    %385 = math.exp %384 : vector<8x64xf32>
    %cst_96 = arith.constant 1.000000e+00 : f32
    %386 = vector.broadcast %cst_96 : f32 to vector<8x64xf32>
    %387 = arith.addf %386, %385 : vector<8x64xf32>
    %388 = arith.divf %386, %387 : vector<8x64xf32>
    %389 = vector.extract_strided_slice %388 {offsets = [0, 0], sizes = [8, 32], strides = [1, 1]} : vector<8x64xf32> to vector<8x32xf32>
    %390 = vector.extract_strided_slice %388 {offsets = [0, 32], sizes = [8, 32], strides = [1, 1]} : vector<8x64xf32> to vector<8x32xf32>
    %391 = vector.extract_strided_slice %379 {offsets = [0, 64], sizes = [8, 32], strides = [1, 1]} : vector<8x96xf32> to vector<8x32xf32>
    %392 = vector.extract_strided_slice %380 {offsets = [0, 64], sizes = [8, 32], strides = [1, 1]} : vector<8x96xf32> to vector<8x32xf32>
    %393 = vector.broadcast %16 : vector<1x32xf32> to vector<8x32xf32>
    %394 = arith.addf %392, %393 : vector<8x32xf32>
    %395 = arith.mulf %389, %394 : vector<8x32xf32>
    %396 = arith.addf %391, %395 : vector<8x32xf32>
    %397 = math.tanh %396 : vector<8x32xf32>
    %cst_97 = arith.constant 1.000000e+00 : f32
    %398 = vector.broadcast %cst_97 : f32 to vector<8x32xf32>
    %399 = arith.subf %398, %390 : vector<8x32xf32>
    %400 = arith.mulf %399, %397 : vector<8x32xf32>
    %401 = arith.mulf %390, %347 : vector<8x32xf32>
    %402 = arith.addf %400, %401 : vector<8x32xf32>
    %c7_i32_98 = arith.constant 7 : i32
    %c8_i32_99 = arith.constant 8 : i32
    %403 = arith.muli %c7_i32_98, %c8_i32_99 : i32
    %404 = tpu.assume_multiple %403, 8 : i32
    %c7_i32_100 = arith.constant 7 : i32
    %405 = arith.subi %c7_i32_100, %c7_i32_98 : i32
    %c8_i32_101 = arith.constant 8 : i32
    %406 = arith.muli %405, %c8_i32_101 : i32
    %407 = tpu.assume_multiple %406, 8 : i32
    %408 = arith.index_cast %404 : i32 to index
    %c0_102 = arith.constant 0 : index
    %409 = vector.load %arg19[%408, %c0_102] : memref<64x96xf32, #tpu.memory_space<vmem>>, vector<8x96xf32>
    %cst_103 = arith.constant dense<0.000000e+00> : vector<8x96xf32>
    %410 = tpu.matmul %377, %13, %cst_103 {dimension_numbers = #tpu.dot_dimension_numbers<[1], [0], [0], [1], [0, 0, 1, 1], [], []>} : vector<8x32xf32>, vector<32x96xf32>, vector<8x96xf32> -> vector<8x96xf32>
    %411 = vector.extract_strided_slice %409 {offsets = [0, 0], sizes = [8, 64], strides = [1, 1]} : vector<8x96xf32> to vector<8x64xf32>
    %412 = vector.extract_strided_slice %410 {offsets = [0, 0], sizes = [8, 64], strides = [1, 1]} : vector<8x96xf32> to vector<8x64xf32>
    %413 = arith.addf %411, %412 : vector<8x64xf32>
    %414 = arith.negf %413 : vector<8x64xf32>
    %415 = math.exp %414 : vector<8x64xf32>
    %cst_104 = arith.constant 1.000000e+00 : f32
    %416 = vector.broadcast %cst_104 : f32 to vector<8x64xf32>
    %417 = arith.addf %416, %415 : vector<8x64xf32>
    %418 = arith.divf %416, %417 : vector<8x64xf32>
    %419 = vector.extract_strided_slice %418 {offsets = [0, 0], sizes = [8, 32], strides = [1, 1]} : vector<8x64xf32> to vector<8x32xf32>
    %420 = vector.extract_strided_slice %418 {offsets = [0, 32], sizes = [8, 32], strides = [1, 1]} : vector<8x64xf32> to vector<8x32xf32>
    %421 = vector.extract_strided_slice %409 {offsets = [0, 64], sizes = [8, 32], strides = [1, 1]} : vector<8x96xf32> to vector<8x32xf32>
    %422 = vector.extract_strided_slice %410 {offsets = [0, 64], sizes = [8, 32], strides = [1, 1]} : vector<8x96xf32> to vector<8x32xf32>
    %423 = vector.broadcast %15 : vector<1x32xf32> to vector<8x32xf32>
    %424 = arith.addf %422, %423 : vector<8x32xf32>
    %425 = arith.mulf %419, %424 : vector<8x32xf32>
    %426 = arith.addf %421, %425 : vector<8x32xf32>
    %427 = math.tanh %426 : vector<8x32xf32>
    %cst_105 = arith.constant 1.000000e+00 : f32
    %428 = vector.broadcast %cst_105 : f32 to vector<8x32xf32>
    %429 = arith.subf %428, %420 : vector<8x32xf32>
    %430 = arith.mulf %429, %427 : vector<8x32xf32>
    %431 = arith.mulf %420, %377 : vector<8x32xf32>
    %432 = arith.addf %430, %431 : vector<8x32xf32>
    %433 = arith.index_cast %407 : i32 to index
    %c0_106 = arith.constant 0 : index
    %434 = vector.load %arg20[%433, %c0_106] : memref<64x96xf32, #tpu.memory_space<vmem>>, vector<8x96xf32>
    %cst_107 = arith.constant dense<0.000000e+00> : vector<8x96xf32>
    %435 = tpu.matmul %402, %14, %cst_107 {dimension_numbers = #tpu.dot_dimension_numbers<[1], [0], [0], [1], [0, 0, 1, 1], [], []>} : vector<8x32xf32>, vector<32x96xf32>, vector<8x96xf32> -> vector<8x96xf32>
    %436 = vector.extract_strided_slice %434 {offsets = [0, 0], sizes = [8, 64], strides = [1, 1]} : vector<8x96xf32> to vector<8x64xf32>
    %437 = vector.extract_strided_slice %435 {offsets = [0, 0], sizes = [8, 64], strides = [1, 1]} : vector<8x96xf32> to vector<8x64xf32>
    %438 = arith.addf %436, %437 : vector<8x64xf32>
    %439 = arith.negf %438 : vector<8x64xf32>
    %440 = math.exp %439 : vector<8x64xf32>
    %cst_108 = arith.constant 1.000000e+00 : f32
    %441 = vector.broadcast %cst_108 : f32 to vector<8x64xf32>
    %442 = arith.addf %441, %440 : vector<8x64xf32>
    %443 = arith.divf %441, %442 : vector<8x64xf32>
    %444 = vector.extract_strided_slice %443 {offsets = [0, 0], sizes = [8, 32], strides = [1, 1]} : vector<8x64xf32> to vector<8x32xf32>
    %445 = vector.extract_strided_slice %443 {offsets = [0, 32], sizes = [8, 32], strides = [1, 1]} : vector<8x64xf32> to vector<8x32xf32>
    %446 = vector.extract_strided_slice %434 {offsets = [0, 64], sizes = [8, 32], strides = [1, 1]} : vector<8x96xf32> to vector<8x32xf32>
    %447 = vector.extract_strided_slice %435 {offsets = [0, 64], sizes = [8, 32], strides = [1, 1]} : vector<8x96xf32> to vector<8x32xf32>
    %448 = vector.broadcast %16 : vector<1x32xf32> to vector<8x32xf32>
    %449 = arith.addf %447, %448 : vector<8x32xf32>
    %450 = arith.mulf %444, %449 : vector<8x32xf32>
    %451 = arith.addf %446, %450 : vector<8x32xf32>
    %452 = math.tanh %451 : vector<8x32xf32>
    %cst_109 = arith.constant 1.000000e+00 : f32
    %453 = vector.broadcast %cst_109 : f32 to vector<8x32xf32>
    %454 = arith.subf %453, %445 : vector<8x32xf32>
    %455 = arith.mulf %454, %452 : vector<8x32xf32>
    %456 = arith.mulf %445, %402 : vector<8x32xf32>
    %457 = arith.addf %455, %456 : vector<8x32xf32>
    %c8_i32_110 = arith.constant 8 : i32
    %c0_111 = arith.constant 0 : index
    %c0_112 = arith.constant 0 : index
    %458 = vector.load %arg9[%c0_111, %c0_112] : memref<32x16xf32, #tpu.memory_space<vmem>>, vector<32x16xf32>
    %cst_113 = arith.constant dense<0.000000e+00> : vector<8x16xf32>
    %459 = tpu.matmul %432, %458, %cst_113 {dimension_numbers = #tpu.dot_dimension_numbers<[1], [0], [0], [1], [0, 0, 1, 1], [], []>} : vector<8x32xf32>, vector<32x16xf32>, vector<8x16xf32> -> vector<8x16xf32>
    %c0_114 = arith.constant 0 : index
    %c0_115 = arith.constant 0 : index
    %460 = vector.load %arg10[%c0_114, %c0_115] : memref<32x16xf32, #tpu.memory_space<vmem>>, vector<32x16xf32>
    %cst_116 = arith.constant dense<0.000000e+00> : vector<8x16xf32>
    %461 = tpu.matmul %457, %460, %cst_116 {dimension_numbers = #tpu.dot_dimension_numbers<[1], [0], [0], [1], [0, 0, 1, 1], [], []>} : vector<8x32xf32>, vector<32x16xf32>, vector<8x16xf32> -> vector<8x16xf32>
    %462 = arith.addf %459, %461 : vector<8x16xf32>
    %c0_117 = arith.constant 0 : index
    %c0_118 = arith.constant 0 : index
    %463 = vector.load %arg11[%c0_117, %c0_118] : memref<1x16xf32, #tpu.memory_space<vmem>>, vector<1x16xf32>
    %464 = vector.broadcast %463 : vector<1x16xf32> to vector<8x16xf32>
    %465 = arith.addf %462, %464 : vector<8x16xf32>
    %c0_119 = arith.constant 0 : index
    %c0_120 = arith.constant 0 : index
    %466 = vector.load %arg12[%c0_119, %c0_120] : memref<32x16xf32, #tpu.memory_space<vmem>>, vector<32x16xf32>
    %cst_121 = arith.constant dense<0.000000e+00> : vector<8x16xf32>
    %467 = tpu.matmul %432, %466, %cst_121 {dimension_numbers = #tpu.dot_dimension_numbers<[1], [0], [0], [1], [0, 0, 1, 1], [], []>} : vector<8x32xf32>, vector<32x16xf32>, vector<8x16xf32> -> vector<8x16xf32>
    %c0_122 = arith.constant 0 : index
    %c0_123 = arith.constant 0 : index
    %468 = vector.load %arg13[%c0_122, %c0_123] : memref<32x16xf32, #tpu.memory_space<vmem>>, vector<32x16xf32>
    %cst_124 = arith.constant dense<0.000000e+00> : vector<8x16xf32>
    %469 = tpu.matmul %457, %468, %cst_124 {dimension_numbers = #tpu.dot_dimension_numbers<[1], [0], [0], [1], [0, 0, 1, 1], [], []>} : vector<8x32xf32>, vector<32x16xf32>, vector<8x16xf32> -> vector<8x16xf32>
    %470 = arith.addf %467, %469 : vector<8x16xf32>
    %c0_125 = arith.constant 0 : index
    %c0_126 = arith.constant 0 : index
    %471 = vector.load %arg14[%c0_125, %c0_126] : memref<1x16xf32, #tpu.memory_space<vmem>>, vector<1x16xf32>
    %472 = vector.broadcast %471 : vector<1x16xf32> to vector<8x16xf32>
    %473 = arith.addf %470, %472 : vector<8x16xf32>
    %474 = math.exp %473 : vector<8x16xf32>
    %c0_127 = arith.constant 0 : index
    %c0_128 = arith.constant 0 : index
    %475 = vector.load %arg16[%c0_127, %c0_128] : memref<8x16xf32, #tpu.memory_space<vmem>>, vector<8x16xf32>
    tpu.vector_store %arg16[%c0_127, %c0_128], %465 {strides = array<i32>} : memref<8x16xf32, #tpu.memory_space<vmem>>, vector<8x16xf32>,
    %c0_129 = arith.constant 0 : index
    %c0_130 = arith.constant 0 : index
    %476 = vector.load %arg17[%c0_129, %c0_130] : memref<8x16xf32, #tpu.memory_space<vmem>>, vector<8x16xf32>
    tpu.vector_store %arg17[%c0_129, %c0_130], %474 {strides = array<i32>} : memref<8x16xf32, #tpu.memory_space<vmem>>, vector<8x16xf32>,
    %c0_131 = arith.constant 0 : index
    %c0_132 = arith.constant 0 : index
    %477 = vector.load %arg15[%c0_131, %c0_132] : memref<8x16xf32, #tpu.memory_space<vmem>>, vector<8x16xf32>
    %478 = arith.mulf %474, %477 : vector<8x16xf32>
    %479 = arith.addf %465, %478 : vector<8x16xf32>
    %c0_133 = arith.constant 0 : index
    %c0_134 = arith.constant 0 : index
    %480 = vector.load %arg18[%c0_133, %c0_134] : memref<8x16xf32, #tpu.memory_space<vmem>>, vector<8x16xf32>
    tpu.vector_store %arg18[%c0_133, %c0_134], %479 {strides = array<i32>} : memref<8x16xf32, #tpu.memory_space<vmem>>, vector<8x16xf32>,
    return
  }
}

</mosaic_0001>

<bundles_post_ra>
// kernel: tpu_custom_call.1
= control target key start
LH: loop header
LB: loop body
LE: loop exit
PB: predicated region body
PF: predicated region fallthrough
CT: control target
= control target key end

     0   :  { %s3578_s0 = inlined_call_operand.vmem [shape: bf16[64,24], index: 0, kind: input, shape index: {}]   ;;  %s3579_s1 = inlined_call_operand.vmem [shape: bf16[24,96], index: 1, kind: input, shape index: {}]   ;;  %s3580_s2 = inlined_call_operand.vmem [shape: f32[32,96], index: 2, kind: input, shape index: {}]   ;;  %s3581_s3 = inlined_call_operand.vmem [shape: f32[1,96], index: 3, kind: input, shape index: {}]   ;;  %s3582_s4 = inlined_call_operand.vmem [shape: f32[1,32], index: 4, kind: input, shape index: {}]   ;;  %s3583_s5 = inlined_call_operand.vmem [shape: bf16[24,96], index: 5, kind: input, shape index: {}]   ;;  %s3584_s6 = inlined_call_operand.vmem [shape: f32[32,96], index: 6, kind: input, shape index: {}]   ;;  %s3585_s7 = inlined_call_operand.vmem [shape: f32[1,96], index: 7, kind: input, shape index: {}]   ;;  %s3586_s8 = inlined_call_operand.vmem [shape: f32[1,32], index: 8, kind: input, shape index: {}]   ;;  %s3587_s9 = inlined_call_operand.vmem [shape: f32[32,16], index: 9, kind: input, shape index: {}]   ;;  %s3588_s10 = inlined_call_operand.vmem [shape: f32[32,16], index: 10, kind: input, shape index: {}]   ;;  %s3589_s11 = inlined_call_operand.vmem [shape: f32[1,16], index: 11, kind: input, shape index: {}]   ;;  %s3590_s12 = inlined_call_operand.vmem [shape: f32[32,16], index: 12, kind: input, shape index: {}]   ;;  %s3591_s13 = inlined_call_operand.vmem [shape: f32[32,16], index: 13, kind: input, shape index: {}]   ;;  %s3592_s14 = inlined_call_operand.vmem [shape: f32[1,16], index: 14, kind: input, shape index: {}]   ;;  %s3593_s15 = inlined_call_operand.vmem [shape: f32[8,16], index: 15, kind: input, shape index: {}]   ;;  %s3594_s16 = inlined_call_operand.hbm [shape: f32[8,16], index: 16, kind: output, shape index: {0}]   ;;  %s3595_s17 = inlined_call_operand.hbm [shape: f32[8,16], index: 17, kind: output, shape index: {1}]   ;;  %s3596_s18 = inlined_call_operand.hbm [shape: f32[8,16], index: 18, kind: output, shape index: {2}]  }
   0x1   :  { %3600 = sst [smem:[#allocation11_spill]] %s3578_s0 }
   0x2   :  { %3601 = sst [smem:[#allocation12_spill]] %s3579_s1 }
   0x3   :  { %3602 = sst [smem:[#allocation13_spill]] %s3580_s2 }
   0x4   :  { %24 = vsyncpa [#allocation5], 0  ;;  %s3603_s29 = sld [smem:[#allocation12_spill]]  ;;  %vm119_vm0 = vcmask 1043456   ;;  %v2768_v2 = vld [vmem:[%s3583_s5 + $0x8] ss:$0 sps:$4 sm:$0xff]  }
   0x5   :  { %v2770_v4 = vld [vmem:[%s3583_s5] sm:$0xff]   ;;  %2759 = vmatprep.subr.msk.bf16.mxu1 %vm119_vm0, %v2768_v2  ;;  %v217_v5 = vsel %vm119_vm0, %v2768_v2, 0  ;;  %s3604_s23 = sld [smem:[#allocation11_spill]]  ;;  %vm106_vm1 = vcmask 195584   ;;  %v2945_v8 = vmov 0.0   ;;  %v3077_v10 = vld [vmem:[%s3584_s6 + $0x18] sm:$0xff] }
   0x6   :  { %2527 = vmatpush3.bf16.msra.mxu1 %v217_v5  ;;  %s3605_s27 = sld [smem:[#allocation13_spill]] }
   0x7   :  { %2528 = vmatprep.subr.bf16.mxu1 %v2770_v4 }
   0xa   :  { %v2767_v0 = vld [vmem:[%s3603_s29 + $0x8] ss:$0 sps:$4 sm:$0xff]   ;;  %v2769_v1 = vld [vmem:[%s3603_s29] sm:$0xff]   ;;  %2529 = vmatpush3.bf16.msra.mxu1 %v2770_v4 }
   0xb   :  { %2758 = vmatprep.subr.msk.bf16.mxu0 %vm119_vm0, %v2767_v0  ;;  %v121_v3 = vsel %vm119_vm0, %v2767_v0, 0  ;;  %v2771_v6 = vld [vmem:[%s3604_s23] sm:$0xff]   ;;  %v2772_v7 = vld [vmem:[%s3604_s23 + $0x8] sm:$0xff]   ;;  %2549 = vmatprep.subr.mxu1 %v2945_v8  ;;  %v2773_v11 = vld [vmem:[%s3604_s23 + $0x10] sm:$0xff]  }
   0xc   :  { %2515 = vmatpush3.bf16.msra.mxu0 %v121_v3  ;;  %2518 = vmatprep.mubr.msk.bf16.mxu0 %vm106_vm1, %v2771_v6  ;;  %v3071_v9 = vld [vmem:[%s3605_s27 + $0x18] sm:$0xff]  ;;  %v3086_v12 = vld [vmem:[%s3605_s27 + $0x10] sm:$0xff] }
   0xd   :  { %2516 = vmatprep.subr.bf16.mxu0 %v2769_v1  ;;  %2530 = vmatprep.mubr.msk.bf16.mxu1 %vm106_vm1, %v2771_v6 }
  0x10   :  { %2517 = vmatpush3.bf16.msra.mxu0 %v2769_v1 }
  0x11   :  { %2538 = vmatprep.subr.mxu0 %v2945_v8 }
  0x13   :  { %2519 = vmatmul.mubr.msk.bf16.vlgmr.msra.gmra.mxu0 %vm106_vm1, %v2772_v7 }
  0x14   :  { %25 = vsyncpa [#allocation7], 0  ;;  %2531 = vmatmul.mubr.msk.bf16.vlgmr.msra.gmra.mxu1 %vm106_vm1, %v2772_v7  ;;  %2539 = vmatpush3.msra.mxu0 %v3071_v9  ;;  %v3095_v13 = vld [vmem:[%s3605_s27 + $0x8] sm:$0xff]  ;;  %v3102_v14 = vld [vmem:[%s3584_s6 + $0x10] sm:$0xff]  ;;  %vm2946_vm2 = vmmov 0   ;;  %s2947_s1 = smov 64  }
  0x15   :  { %2540 = vmatprep.subr.mxu0 %v2945_v8  ;;  %2550 = vmatpush3.msra.mxu1 %v3077_v10  ;;  %v2774_v15 = vld [vmem:[%s3604_s23 + $0x18] sm:$0xff]   ;;  %v3112_v16 = vld [vmem:[%s3605_s27] sm:$0xff]  ;;  %v3119_v17 = vld [vmem:[%s3584_s6 + $0x8] sm:$0xff]  ;;  %vm188_vm3 = vcmask 785408   ;;  %vm303_vm4 = vcmask 261120   ;;  %s2949_s29 = smov [#allocation4]  }
  0x16   :  { %2541 = vmatpush3.msra.mxu0 %v3086_v12  ;;  %2522 = vmatprep.mubr.msk.bf16.mxu0 %vm106_vm1, %v2773_v11  ;;  %v3130_v18 = vld [vmem:[%s3584_s6] sm:$0xff]  ;;  %s2311_s23 = sshll.u32 %s2949_s29, 4  ;;  %vm2298_vm5 = vcmask 130048   ;;  %s2312_s23 = int_to_ptr.vmem [resolvable:$true] %s2311_s23 }
  0x17   :  { %2534 = vmatprep.mubr.msk.bf16.mxu1 %vm106_vm1, %v2773_v11  ;;  %2542 = vmatprep.subr.mxu0 %v2945_v8  ;;  %v2365_v19 = vld [vmem:[%s3582_s4] ss:$0 sm:$0xff]  ;;  %p2886_p1 = scmp.lt.s32.totalorder %s2312_s23, %s2312_s23 }
  0x18   :  { %2551 = vmatprep.subr.mxu1 %v2945_v8  ;;  %2543 = vmatpush3.msra.mxu0 %v3095_v13  ;;  %v2367_v20 = vld [vmem:[%s3586_s8] ss:$0 sm:$0xff] }
  0x19   :  { %2552 = vmatpush3.msra.mxu1 %v3102_v14  ;;  %2544 = vmatprep.subr.mxu0 %v2945_v8  ;;  %v2346_v21 = vld [vmem:[%s3581_s3] ss:$0 sm:$0xff]  ;;  %s2948_s3 = smov 96  }
  0x1a   :  { %2553 = vmatprep.subr.mxu1 %v2945_v8  ;;  %2545 = vmatpush3.msra.mxu0 %v3112_v16  ;;  %v2357_v22 = vld [vmem:[%s3585_s7] ss:$0 sm:$0xff] }
  0x1b   :  { %2523 = vmatmul.mubr.msk.bf16.gmra.mxu0 %vm106_vm1, %v2774_v15  ;;  %2554 = vmatpush3.msra.mxu1 %v3119_v17 }
  0x1c   :  { %2535 = vmatmul.mubr.msk.bf16.gmra.mxu1 %vm106_vm1, %v2774_v15  ;;  %2546 = vmatprep.mubr.msk.f32.mxu0 %vm2946_vm2, %v2945_v8 }
  0x1d   :  { %2555 = vmatprep.subr.mxu1 %v2945_v8  ;;  %2557 = vmatprep.mubr.msk.f32.mxu1 %vm2946_vm2, %v2945_v8 }
  0x1e   :  { %2556 = vmatpush3.msra.mxu1 %v3130_v18  ;;  %389 = vrot.lane.b32.xlu0 %v2365_v19, %s2947_s1 }
  0x1f   :  { %2560 = vmatprep.subr.mxu0 %v2945_v8  ;;  %2571 = vmatprep.subr.mxu1 %v2945_v8 }
  0x22   :  { %496 = vrot.lane.b32.xlu0 %v2367_v20, %s2947_s1 }
  0x23   :  { %2547 = vmatmul.mubr.f32.vlgmr.msra.gmra.mxu0 %v2945_v8 }
  0x24   :  { %2558 = vmatmul.mubr.f32.vlgmr.msra.gmra.mxu1 %v2945_v8  ;;  %2561 = vmatpush3.msra.mxu0 %v3071_v9 }
  0x25   :  { %2562 = vmatprep.subr.mxu0 %v2945_v8  ;;  %2572 = vmatpush3.msra.mxu1 %v3077_v10 }
  0x26   :  { %2563 = vmatpush3.msra.mxu0 %v3086_v12  ;;  %2573 = vmatprep.subr.mxu1 %v2945_v8 }
  0x27   :  { %2564 = vmatprep.subr.mxu0 %v2945_v8  ;;  %2568 = vmatprep.mubr.msk.f32.mxu0 %vm2946_vm2, %v2945_v8 }
  0x28   :  { %2565 = vmatpush3.msra.mxu0 %v3095_v13  ;;  %2574 = vmatpush3.msra.mxu1 %v3102_v14 }
  0x29   :  { %2566 = vmatprep.subr.mxu0 %v2945_v8  ;;  %2575 = vmatprep.subr.mxu1 %v2945_v8 }
  0x2a   :  { %2567 = vmatpush3.msra.mxu0 %v3112_v16  ;;  %2576 = vmatpush3.msra.mxu1 %v3119_v17 }
  0x2b   :  { %2577 = vmatprep.subr.mxu1 %v2945_v8  ;;  %2579 = vmatprep.mubr.msk.f32.mxu1 %vm2946_vm2, %v2945_v8 }
  0x2c   :  { %2578 = vmatpush3.msra.mxu1 %v3130_v18  ;;  %2582 = vmatprep.subr.mxu0 %v2945_v8 }
  0x2d   :  { %2593 = vmatprep.subr.mxu1 %v2945_v8 }
  0x90   :  { %v3185_v44 = vpop.permute.xlu0 %389 }
  0x94   :  { %v3193_v57 = vpop.permute.xlu0 %496 }
  0xd3   :  { %v2520_v23 = vpop.f32.mrf.mxu0 }
  0xd4   :  { %v166_v24 = vadd.f32 %v2520_v23, %v2346_v21  ;;  %v2532_v25 = vpop.f32.mrf.mxu1 }
  0xd5   :  { %v262_v26 = vadd.f32 %v2532_v25, %v2357_v22  ;;  %v157_v27 = vpop.f32.mrf.mxu0 }
  0xd6   :  { %191 = vst.msk [vmem:[#allocation2 + $0x10] sm:$0xff] %vm188_vm3, %v166_v24  ;;  %v158_v28 = vadd.f32 %v2346_v21, %v157_v27  ;;  %v253_v29 = vpop.f32.mrf.mxu1 }
  0xd7   :  { %286 = vst.msk [vmem:[#allocation3 + $0x10] sm:$0xff] %vm188_vm3, %v262_v26  ;;  %v254_v30 = vadd.f32 %v2357_v22, %v253_v29  ;;  %v2521_v31 = vpop.f32.mrf.mxu0 }
  0xd8   :  { %189 = vst.msk [vmem:[#allocation2] sm:$0xff] %vm188_vm3, %v158_v28  ;;  %v169_v32 = vadd.f32 %v2521_v31, %v2346_v21  ;;  %v2533_v33 = vpop.f32.mrf.mxu1 }
  0xd9   :  { %284 = vst.msk [vmem:[#allocation3] sm:$0xff] %vm188_vm3, %v254_v30  ;;  %v265_v34 = vadd.f32 %v2533_v33, %v2357_v22  ;;  %v160_v35 = vpop.f32.mrf.mxu0 }
  0xda   :  { %192 = vst.msk [vmem:[#allocation2 + $0x18] sm:$0xff] %vm188_vm3, %v169_v32  ;;  %v161_v36 = vadd.f32 %v2346_v21, %v160_v35  ;;  %v256_v37 = vpop.f32.mrf.mxu1 }
  0xdb   :  { %287 = vst.msk [vmem:[#allocation3 + $0x18] sm:$0xff] %vm188_vm3, %v265_v34  ;;  %v257_v38 = vadd.f32 %v2357_v22, %v256_v37  ;;  %v2524_v39 = vpop.f32.mrf.mxu0 }
  0xdc   :  { %190 = vst.msk [vmem:[#allocation2 + $0x8] sm:$0xff] %vm188_vm3, %v161_v36  ;;  %v182_v40 = vadd.f32 %v2524_v39, %v2346_v21  ;;  %v2536_v41 = vpop.f32.mrf.mxu1 }
  0xdd   :  { %285 = vst.msk [vmem:[#allocation3 + $0x8] sm:$0xff] %vm188_vm3, %v257_v38  ;;  %v278_v42 = vadd.f32 %v2536_v41, %v2357_v22  ;;  %v173_v43 = vpop.f32.mrf.mxu0 }
  0xde   :  { %195 = vst.msk [vmem:[#allocation2 + $0x30] sm:$0xff] %vm188_vm3, %v182_v40  ;;  %v174_v45 = vadd.f32 %v2346_v21, %v173_v43  ;;  %v269_v46 = vpop.f32.mrf.mxu1 }
  0xdf   :  { %290 = vst.msk [vmem:[#allocation3 + $0x30] sm:$0xff] %vm188_vm3, %v278_v42  ;;  %v270_v47 = vadd.f32 %v2357_v22, %v269_v46  ;;  %v2525_v48 = vpop.f32.mrf.mxu0  ;;  %v302_v63 = vld [vmem:[#allocation2] sm:$0xff] }
  0xe0   :  { %193 = vst.msk [vmem:[#allocation2 + $0x20] sm:$0xff] %vm188_vm3, %v174_v45  ;;  %v185_v49 = vadd.f32 %v2525_v48, %v2346_v21  ;;  %v2537_v50 = vpop.f32.mrf.mxu1 }
  0xe1   :  { %288 = vst.msk [vmem:[#allocation3 + $0x20] sm:$0xff] %vm188_vm3, %v270_v47  ;;  %v281_v51 = vadd.f32 %v2537_v50, %v2357_v22  ;;  %v176_v52 = vpop.f32.mrf.mxu0 }
  0xe2   :  { %196 = vst.msk [vmem:[#allocation2 + $0x38] sm:$0xff] %vm188_vm3, %v185_v49  ;;  %v177_v53 = vadd.f32 %v2346_v21, %v176_v52  ;;  %v272_v54 = vpop.f32.mrf.mxu1 }
  0xe3   :  { %291 = vst.msk [vmem:[#allocation3 + $0x38] sm:$0xff] %vm188_vm3, %v281_v51  ;;  %v273_v55 = vadd.f32 %v2357_v22, %v272_v54  ;;  %v373_v56 = vpop.f32.mrf.mxu0  ;;  %v520_v49 = vld [vmem:[#allocation2 + $0x8] sm:$0xff] }
  0xe4   :  { %194 = vst.msk [vmem:[#allocation2 + $0x28] sm:$0xff] %vm188_vm3, %v177_v53  ;;  %v480_v58 = vpop.f32.mrf.mxu1  ;;  %v392_v59 = vadd.f32 %v3185_v44, %v373_v56  ;;  %v377_v0 = vadd.f32 %v373_v56, %v302_v63 }
  0xe5   :  { %289 = vst.msk [vmem:[#allocation3 + $0x28] sm:$0xff] %vm188_vm3, %v273_v55  ;;  %v2548_v60 = vpop.f32.mrf.mxu0  ;;  %v499_v62 = vadd.f32 %v3193_v57, %v480_v58 }
  0xe6   :  { %394 = vrot.lane.b32.xlu1 %v392_v59, %s2947_s1  ;;  %v2559_v61 = vpop.f32.mrf.mxu1  ;;  %v2364_v2 = vmul.f32 -1.442695, %v377_v0  ;;  %v624_v51 = vld [vmem:[#allocation3 + $0x30] sm:$0xff] }
  0xe8   :  { %2775 = vpow2.f32 %v2364_v2 }
  0xea   :  { %501 = vrot.lane.b32.xlu1 %v499_v62, %s2947_s1  ;;  %v413_v1 = vld [vmem:[#allocation3 + $0x38] sm:$0xff] }
  0xeb   :  { %v484_v3 = vadd.f32 %v480_v58, %v413_v1 }
  0xed   :  { %v2366_v4 = vmul.f32 -1.442695, %v484_v3 }
  0xef   :  { %2777 = vpow2.f32 %v2366_v4 }
  0xf5   :  { %v2776_v5 = vpop.eup %2775 }
  0xf6   :  { %v381_v6 = vadd.f32 1.0, %v2776_v5 }
  0xf8   :  { %2779 = vrcp.f32 %v381_v6 }
  0xfc   :  { %v2778_v7 = vpop.eup %2777 }
  0xfd   :  { %v488_v11 = vadd.f32 1.0, %v2778_v7 }
  0xff   :  { %2781 = vrcp.f32 %v488_v11 }
 0x105   :  { %v2780_v15 = vpop.eup %2779 }
 0x106   :  { %v404_v30 = vsub.f32 1.0, %v2780_v15  ;;  %v410_v32 = vmul.f32 0.0, %v2780_v15 }
 0x10c   :  { %v2782_v21 = vpop.eup %2781 }
 0x10d   :  { %v511_v35 = vsub.f32 1.0, %v2782_v21  ;;  %v517_v37 = vmul.f32 0.0, %v2782_v21 }
 0x158   :  { %v395_v19 = vpop.permute.xlu1 %394 }
 0x159   :  { %v397_v20 = vmul.f32 %v2780_v15, %v395_v19 }
 0x15b   :  { %399 = vrot.lane.b32.xlu0 %v397_v20, %s2947_s1 }
 0x15c   :  { %v502_v22 = vpop.permute.xlu1 %501 }
 0x15d   :  { %v504_v23 = vmul.f32 %v2782_v21, %v502_v22 }
 0x15f   :  { %506 = vrot.lane.b32.xlu1 %v504_v23, %s2947_s1 }
 0x1cd   :  { %v400_v24 = vpop.permute.xlu0 %399 }
 0x1ce   :  { %v402_v25 = vadd.f32 %v400_v24, %v302_v63 }
 0x1d0   :  { %2783 = vtanh.f32 %v402_v25 }
 0x1d1   :  { %v507_v26 = vpop.permute.xlu1 %506 }
 0x1d2   :  { %v509_v27 = vadd.f32 %v507_v26, %v413_v1 }
 0x1d4   :  { %2785 = vtanh.f32 %v509_v27 }
 0x1dd   :  { %v2784_v28 = vpop.eup %2783 }
 0x1de   :  { %406 = vrot.lane.b32.xlu0 %v2784_v28, %s2948_s3 }
 0x1e1   :  { %v2786_v29 = vpop.eup %2785 }
 0x1e2   :  { %513 = vrot.lane.b32.xlu1 %v2786_v29, %s2948_s3 }
 0x250   :  { %v407_v31 = vpop.permute.xlu0 %406 }
 0x251   :  { %v409_v33 = vmul.f32 %v407_v31, %v404_v30 }
 0x253   :  { %v3205_v34 = vadd.f32 %v410_v32, %v409_v33 }
 0x254   :  { %v514_v36 = vpop.permute.xlu1 %513 }
 0x255   :  { %v516_v38 = vmul.f32 %v514_v36, %v511_v35  ;;  %522 = vrot.lane.b32.xlu0 %v3205_v34, %s2948_s3  ;;  %v728_v35 = vld [vmem:[#allocation2 + $0x10] sm:$0xff] }
 0x257   :  { %v3209_v39 = vadd.f32 %v517_v37, %v516_v38  ;;  %v832_v37 = vld [vmem:[#allocation3 + $0x28] sm:$0xff] }
 0x259   :  { %626 = vrot.lane.b32.xlu1 %v3209_v39, %s2948_s3 }
 0x2c7   :  { %v523_v40 = vpop.permute.xlu0 %522 }
 0x2c8   :  { %2569 = vmatmul.mubr.msk.f32.vlgmr.msra.gmra.mxu0 %vm303_vm4, %v523_v40 }
 0x2c9   :  { %2583 = vmatpush3.msra.mxu0 %v3071_v9  ;;  %2590 = vmatprep.mubr.msk.f32.mxu0 %vm2946_vm2, %v2945_v8 }
 0x2ca   :  { %2584 = vmatprep.subr.mxu0 %v2945_v8 }
 0x2cb   :  { %v627_v41 = vpop.permute.xlu1 %626  ;;  %2585 = vmatpush3.msra.mxu0 %v3086_v12 }
 0x2cc   :  { %2580 = vmatmul.mubr.msk.f32.vlgmr.msra.gmra.mxu1 %vm303_vm4, %v627_v41  ;;  %2586 = vmatprep.subr.mxu0 %v2945_v8 }
 0x2cd   :  { %2587 = vmatpush3.msra.mxu0 %v3095_v13  ;;  %2594 = vmatpush3.msra.mxu1 %v3077_v10 }
 0x2ce   :  { %2588 = vmatprep.subr.mxu0 %v2945_v8  ;;  %2595 = vmatprep.subr.mxu1 %v2945_v8 }
 0x2cf   :  { %2589 = vmatpush3.msra.mxu0 %v3112_v16  ;;  %2596 = vmatpush3.msra.mxu1 %v3102_v14 }
 0x2d0   :  { %2597 = vmatprep.subr.mxu1 %v2945_v8  ;;  %2601 = vmatprep.mubr.msk.f32.mxu1 %vm2946_vm2, %v2945_v8 }
 0x2d1   :  { %2598 = vmatpush3.msra.mxu1 %v3119_v17  ;;  %2604 = vmatprep.subr.mxu0 %v2945_v8 }
 0x2d2   :  { %2599 = vmatprep.subr.mxu1 %v2945_v8 }
 0x2d3   :  { %2600 = vmatpush3.msra.mxu1 %v3130_v18 }
 0x2d4   :  { %2615 = vmatprep.subr.mxu1 %v2945_v8 }
 0x388   :  { %v592_v42 = vpop.f32.mrf.mxu0 }
 0x389   :  { %v603_v43 = vadd.f32 %v592_v42, %v3185_v44  ;;  %v596_v50 = vadd.f32 %v592_v42, %v520_v49 }
 0x38a   :  { %v2570_v45 = vpop.f32.mrf.mxu0 }
 0x38b   :  { %605 = vrot.lane.b32.xlu0 %v603_v43, %s2947_s1  ;;  %v2369_v52 = vmul.f32 -1.442695, %v596_v50 }
 0x38c   :  { %v696_v46 = vpop.f32.mrf.mxu1 }
 0x38d   :  { %v707_v47 = vadd.f32 %v696_v46, %v3193_v57  ;;  %v700_v53 = vadd.f32 %v696_v46, %v624_v51  ;;  %2787 = vpow2.f32 %v2369_v52 }
 0x38e   :  { %v2581_v48 = vpop.f32.mrf.mxu1 }
 0x38f   :  { %709 = vrot.lane.b32.xlu1 %v707_v47, %s2947_s1  ;;  %v2371_v54 = vmul.f32 -1.442695, %v700_v53 }
 0x391   :  { %2789 = vpow2.f32 %v2371_v54 }
 0x39a   :  { %v2788_v55 = vpop.eup %2787 }
 0x39b   :  { %v600_v56 = vadd.f32 1.0, %v2788_v55 }
 0x39d   :  { %2791 = vrcp.f32 %v600_v56 }
 0x39e   :  { %v2790_v58 = vpop.eup %2789 }
 0x39f   :  { %v704_v59 = vadd.f32 1.0, %v2790_v58 }
 0x3a1   :  { %2793 = vrcp.f32 %v704_v59 }
 0x3aa   :  { %v2792_v60 = vpop.eup %2791 }
 0x3ab   :  { %v615_v11 = vsub.f32 1.0, %v2792_v60  ;;  %v621_v19 = vmul.f32 %v2792_v60, %v3205_v34 }
 0x3ae   :  { %v2794_v63 = vpop.eup %2793 }
 0x3af   :  { %v719_v22 = vsub.f32 1.0, %v2794_v63  ;;  %v725_v24 = vmul.f32 %v2794_v63, %v3209_v39 }
 0x3fd   :  { %v606_v61 = vpop.permute.xlu0 %605 }
 0x3fe   :  { %v608_v62 = vmul.f32 %v2792_v60, %v606_v61 }
 0x400   :  { %610 = vrot.lane.b32.xlu0 %v608_v62, %s2947_s1 }
 0x401   :  { %v710_v0 = vpop.permute.xlu1 %709 }
 0x402   :  { %v712_v1 = vmul.f32 %v2794_v63, %v710_v0 }
 0x404   :  { %714 = vrot.lane.b32.xlu1 %v712_v1, %s2947_s1 }
 0x472   :  { %v611_v2 = vpop.permute.xlu0 %610 }
 0x473   :  { %v613_v3 = vadd.f32 %v611_v2, %v520_v49 }
 0x475   :  { %2795 = vtanh.f32 %v613_v3 }
 0x476   :  { %v715_v4 = vpop.permute.xlu1 %714 }
 0x477   :  { %v717_v5 = vadd.f32 %v715_v4, %v624_v51 }
 0x479   :  { %2797 = vtanh.f32 %v717_v5 }
 0x482   :  { %v2796_v6 = vpop.eup %2795 }
 0x483   :  { %617 = vrot.lane.b32.xlu0 %v2796_v6, %s2948_s3 }
 0x486   :  { %v2798_v7 = vpop.eup %2797 }
 0x487   :  { %721 = vrot.lane.b32.xlu1 %v2798_v7, %s2948_s3 }
 0x4f5   :  { %v618_v15 = vpop.permute.xlu0 %617 }
 0x4f6   :  { %v620_v20 = vmul.f32 %v618_v15, %v615_v11 }
 0x4f8   :  { %v3244_v21 = vadd.f32 %v621_v19, %v620_v20 }
 0x4f9   :  { %v722_v23 = vpop.permute.xlu1 %721 }
 0x4fa   :  { %v724_v25 = vmul.f32 %v722_v23, %v719_v22  ;;  %730 = vrot.lane.b32.xlu0 %v3244_v21, %s2948_s3  ;;  %v936_v22 = vld [vmem:[#allocation2 + $0x18] sm:$0xff] }
 0x4fc   :  { %v3249_v26 = vadd.f32 %v725_v24, %v724_v25  ;;  %v1040_v24 = vld [vmem:[#allocation3 + $0x20] sm:$0xff] }
 0x4fe   :  { %834 = vrot.lane.b32.xlu1 %v3249_v26, %s2948_s3 }
 0x56c   :  { %v731_v27 = vpop.permute.xlu0 %730 }
 0x56d   :  { %2591 = vmatmul.mubr.msk.f32.vlgmr.msra.gmra.mxu0 %vm303_vm4, %v731_v27 }
 0x56e   :  { %2605 = vmatpush3.msra.mxu0 %v3071_v9  ;;  %2612 = vmatprep.mubr.msk.f32.mxu0 %vm2946_vm2, %v2945_v8 }
 0x56f   :  { %2606 = vmatprep.subr.mxu0 %v2945_v8 }
 0x570   :  { %v835_v28 = vpop.permute.xlu1 %834  ;;  %2607 = vmatpush3.msra.mxu0 %v3086_v12 }
 0x571   :  { %2602 = vmatmul.mubr.msk.f32.vlgmr.msra.gmra.mxu1 %vm303_vm4, %v835_v28  ;;  %2608 = vmatprep.subr.mxu0 %v2945_v8 }
 0x572   :  { %2609 = vmatpush3.msra.mxu0 %v3095_v13  ;;  %2616 = vmatpush3.msra.mxu1 %v3077_v10 }
 0x573   :  { %2610 = vmatprep.subr.mxu0 %v2945_v8  ;;  %2617 = vmatprep.subr.mxu1 %v2945_v8 }
 0x574   :  { %2611 = vmatpush3.msra.mxu0 %v3112_v16  ;;  %2618 = vmatpush3.msra.mxu1 %v3102_v14 }
 0x575   :  { %2619 = vmatprep.subr.mxu1 %v2945_v8  ;;  %2623 = vmatprep.mubr.msk.f32.mxu1 %vm2946_vm2, %v2945_v8 }
 0x576   :  { %2620 = vmatpush3.msra.mxu1 %v3119_v17  ;;  %2626 = vmatprep.subr.mxu0 %v2945_v8 }
 0x577   :  { %2621 = vmatprep.subr.mxu1 %v2945_v8 }
 0x578   :  { %2622 = vmatpush3.msra.mxu1 %v3130_v18 }
 0x579   :  { %2637 = vmatprep.subr.mxu1 %v2945_v8 }
 0x62d   :  { %v800_v29 = vpop.f32.mrf.mxu0 }
 0x62e   :  { %v811_v30 = vadd.f32 %v800_v29, %v3185_v44  ;;  %v804_v36 = vadd.f32 %v800_v29, %v728_v35 }
 0x62f   :  { %v2592_v31 = vpop.f32.mrf.mxu0 }
 0x630   :  { %813 = vrot.lane.b32.xlu0 %v811_v30, %s2947_s1  ;;  %v2373_v38 = vmul.f32 -1.442695, %v804_v36 }
 0x631   :  { %v904_v32 = vpop.f32.mrf.mxu1 }
 0x632   :  { %v915_v33 = vadd.f32 %v904_v32, %v3193_v57  ;;  %v908_v39 = vadd.f32 %v904_v32, %v832_v37  ;;  %2799 = vpow2.f32 %v2373_v38 }
 0x633   :  { %v2603_v34 = vpop.f32.mrf.mxu1 }
 0x634   :  { %917 = vrot.lane.b32.xlu1 %v915_v33, %s2947_s1  ;;  %v2375_v40 = vmul.f32 -1.442695, %v908_v39 }
 0x636   :  { %2801 = vpow2.f32 %v2375_v40 }
 0x63f   :  { %v2800_v41 = vpop.eup %2799 }
 0x640   :  { %v808_v42 = vadd.f32 1.0, %v2800_v41 }
 0x642   :  { %2803 = vrcp.f32 %v808_v42 }
 0x643   :  { %v2802_v43 = vpop.eup %2801 }
 0x644   :  { %v912_v45 = vadd.f32 1.0, %v2802_v43 }
 0x646   :  { %2805 = vrcp.f32 %v912_v45 }
 0x64f   :  { %v2804_v46 = vpop.eup %2803 }
 0x650   :  { %v823_v59 = vsub.f32 1.0, %v2804_v46  ;;  %v829_v61 = vmul.f32 %v2804_v46, %v3244_v21 }
 0x653   :  { %v2806_v49 = vpop.eup %2805 }
 0x654   :  { %v927_v0 = vsub.f32 1.0, %v2806_v49  ;;  %v933_v2 = vmul.f32 %v2806_v49, %v3249_v26 }
 0x6a2   :  { %v814_v47 = vpop.permute.xlu0 %813 }
 0x6a3   :  { %v816_v48 = vmul.f32 %v2804_v46, %v814_v47 }
 0x6a5   :  { %818 = vrot.lane.b32.xlu0 %v816_v48, %s2947_s1 }
 0x6a6   :  { %v918_v50 = vpop.permute.xlu1 %917 }
 0x6a7   :  { %v920_v51 = vmul.f32 %v2806_v49, %v918_v50 }
 0x6a9   :  { %922 = vrot.lane.b32.xlu1 %v920_v51, %s2947_s1 }
 0x717   :  { %v819_v52 = vpop.permute.xlu0 %818 }
 0x718   :  { %v821_v53 = vadd.f32 %v819_v52, %v728_v35 }
 0x71a   :  { %2807 = vtanh.f32 %v821_v53 }
 0x71b   :  { %v923_v54 = vpop.permute.xlu1 %922 }
 0x71c   :  { %v925_v55 = vadd.f32 %v923_v54, %v832_v37 }
 0x71e   :  { %2809 = vtanh.f32 %v925_v55 }
 0x727   :  { %v2808_v56 = vpop.eup %2807 }
 0x728   :  { %825 = vrot.lane.b32.xlu0 %v2808_v56, %s2948_s3 }
 0x72b   :  { %v2810_v58 = vpop.eup %2809 }
 0x72c   :  { %929 = vrot.lane.b32.xlu1 %v2810_v58, %s2948_s3 }
 0x79a   :  { %v826_v60 = vpop.permute.xlu0 %825 }
 0x79b   :  { %v828_v62 = vmul.f32 %v826_v60, %v823_v59 }
 0x79d   :  { %v3284_v63 = vadd.f32 %v829_v61, %v828_v62 }
 0x79e   :  { %v930_v1 = vpop.permute.xlu1 %929 }
 0x79f   :  { %v932_v3 = vmul.f32 %v930_v1, %v927_v0  ;;  %938 = vrot.lane.b32.xlu0 %v3284_v63, %s2948_s3  ;;  %v1144_v0 = vld [vmem:[#allocation2 + $0x20] sm:$0xff] }
 0x7a1   :  { %v3289_v4 = vadd.f32 %v933_v2, %v932_v3  ;;  %v1248_v2 = vld [vmem:[#allocation3 + $0x18] sm:$0xff] }
 0x7a3   :  { %1042 = vrot.lane.b32.xlu1 %v3289_v4, %s2948_s3 }
 0x811   :  { %v939_v5 = vpop.permute.xlu0 %938 }
 0x812   :  { %2613 = vmatmul.mubr.msk.f32.vlgmr.msra.gmra.mxu0 %vm303_vm4, %v939_v5 }
 0x813   :  { %2627 = vmatpush3.msra.mxu0 %v3071_v9  ;;  %2634 = vmatprep.mubr.msk.f32.mxu0 %vm2946_vm2, %v2945_v8 }
 0x814   :  { %2628 = vmatprep.subr.mxu0 %v2945_v8 }
 0x815   :  { %v1043_v6 = vpop.permute.xlu1 %1042  ;;  %2629 = vmatpush3.msra.mxu0 %v3086_v12 }
 0x816   :  { %2624 = vmatmul.mubr.msk.f32.vlgmr.msra.gmra.mxu1 %vm303_vm4, %v1043_v6  ;;  %2630 = vmatprep.subr.mxu0 %v2945_v8 }
 0x817   :  { %2631 = vmatpush3.msra.mxu0 %v3095_v13  ;;  %2638 = vmatpush3.msra.mxu1 %v3077_v10 }
 0x818   :  { %2632 = vmatprep.subr.mxu0 %v2945_v8  ;;  %2639 = vmatprep.subr.mxu1 %v2945_v8 }
 0x819   :  { %2633 = vmatpush3.msra.mxu0 %v3112_v16  ;;  %2640 = vmatpush3.msra.mxu1 %v3102_v14 }
 0x81a   :  { %2641 = vmatprep.subr.mxu1 %v2945_v8  ;;  %2645 = vmatprep.mubr.msk.f32.mxu1 %vm2946_vm2, %v2945_v8 }
 0x81b   :  { %2642 = vmatpush3.msra.mxu1 %v3119_v17  ;;  %2648 = vmatprep.subr.mxu0 %v2945_v8 }
 0x81c   :  { %2643 = vmatprep.subr.mxu1 %v2945_v8 }
 0x81d   :  { %2644 = vmatpush3.msra.mxu1 %v3130_v18 }
 0x81e   :  { %2659 = vmatprep.subr.mxu1 %v2945_v8 }
 0x8d2   :  { %v1008_v7 = vpop.f32.mrf.mxu0 }
 0x8d3   :  { %v1019_v11 = vadd.f32 %v1008_v7, %v3185_v44  ;;  %v1012_v23 = vadd.f32 %v1008_v7, %v936_v22 }
 0x8d4   :  { %v2614_v15 = vpop.f32.mrf.mxu0 }
 0x8d5   :  { %1021 = vrot.lane.b32.xlu0 %v1019_v11, %s2947_s1  ;;  %v2377_v25 = vmul.f32 -1.442695, %v1012_v23 }
 0x8d6   :  { %v1112_v19 = vpop.f32.mrf.mxu1 }
 0x8d7   :  { %v1123_v20 = vadd.f32 %v1112_v19, %v3193_v57  ;;  %v1116_v26 = vadd.f32 %v1112_v19, %v1040_v24  ;;  %2811 = vpow2.f32 %v2377_v25 }
 0x8d8   :  { %v2625_v21 = vpop.f32.mrf.mxu1 }
 0x8d9   :  { %1125 = vrot.lane.b32.xlu1 %v1123_v20, %s2947_s1  ;;  %v2379_v27 = vmul.f32 -1.442695, %v1116_v26 }
 0x8db   :  { %2813 = vpow2.f32 %v2379_v27 }
 0x8e4   :  { %v2812_v28 = vpop.eup %2811 }
 0x8e5   :  { %v1016_v29 = vadd.f32 1.0, %v2812_v28 }
 0x8e7   :  { %2815 = vrcp.f32 %v1016_v29 }
 0x8e8   :  { %v2814_v30 = vpop.eup %2813 }
 0x8e9   :  { %v1120_v31 = vadd.f32 1.0, %v2814_v30 }
 0x8eb   :  { %2817 = vrcp.f32 %v1120_v31 }
 0x8f4   :  { %v2816_v32 = vpop.eup %2815 }
 0x8f5   :  { %v1031_v45 = vsub.f32 1.0, %v2816_v32  ;;  %v1037_v47 = vmul.f32 %v2816_v32, %v3284_v63 }
 0x8f8   :  { %v2818_v35 = vpop.eup %2817 }
 0x8f9   :  { %v1135_v50 = vsub.f32 1.0, %v2818_v35  ;;  %v1141_v52 = vmul.f32 %v2818_v35, %v3289_v4 }
 0x947   :  { %v1022_v33 = vpop.permute.xlu0 %1021 }
 0x948   :  { %v1024_v34 = vmul.f32 %v2816_v32, %v1022_v33 }
 0x94a   :  { %1026 = vrot.lane.b32.xlu0 %v1024_v34, %s2947_s1 }
 0x94b   :  { %v1126_v36 = vpop.permute.xlu1 %1125 }
 0x94c   :  { %v1128_v37 = vmul.f32 %v2818_v35, %v1126_v36 }
 0x94e   :  { %1130 = vrot.lane.b32.xlu1 %v1128_v37, %s2947_s1 }
 0x9bc   :  { %v1027_v38 = vpop.permute.xlu0 %1026 }
 0x9bd   :  { %v1029_v39 = vadd.f32 %v1027_v38, %v936_v22 }
 0x9bf   :  { %2819 = vtanh.f32 %v1029_v39 }
 0x9c0   :  { %v1131_v40 = vpop.permute.xlu1 %1130 }
 0x9c1   :  { %v1133_v41 = vadd.f32 %v1131_v40, %v1040_v24 }
 0x9c3   :  { %2821 = vtanh.f32 %v1133_v41 }
 0x9cc   :  { %v2820_v42 = vpop.eup %2819 }
 0x9cd   :  { %1033 = vrot.lane.b32.xlu0 %v2820_v42, %s2948_s3 }
 0x9d0   :  { %v2822_v43 = vpop.eup %2821 }
 0x9d1   :  { %1137 = vrot.lane.b32.xlu1 %v2822_v43, %s2948_s3 }
 0xa3f   :  { %v1034_v46 = vpop.permute.xlu0 %1033 }
 0xa40   :  { %v1036_v48 = vmul.f32 %v1034_v46, %v1031_v45  ;;  %v1456_v45 = vld [vmem:[#allocation3 + $0x10] sm:$0xff] }
 0xa42   :  { %v3324_v49 = vadd.f32 %v1037_v47, %v1036_v48 }
 0xa43   :  { %v1138_v51 = vpop.permute.xlu1 %1137 }
 0xa44   :  { %v1140_v53 = vmul.f32 %v1138_v51, %v1135_v50  ;;  %1146 = vrot.lane.b32.xlu0 %v3324_v49, %s2948_s3 }
 0xa46   :  { %v3329_v54 = vadd.f32 %v1141_v52, %v1140_v53 }
 0xa48   :  { %1250 = vrot.lane.b32.xlu1 %v3329_v54, %s2948_s3 }
 0xab6   :  { %v1147_v55 = vpop.permute.xlu0 %1146 }
 0xab7   :  { %2635 = vmatmul.mubr.msk.f32.vlgmr.msra.gmra.mxu0 %vm303_vm4, %v1147_v55 }
 0xab8   :  { %2649 = vmatpush3.msra.mxu0 %v3071_v9  ;;  %2656 = vmatprep.mubr.msk.f32.mxu0 %vm2946_vm2, %v2945_v8 }
 0xab9   :  { %2650 = vmatprep.subr.mxu0 %v2945_v8 }
 0xaba   :  { %v1251_v56 = vpop.permute.xlu1 %1250  ;;  %2651 = vmatpush3.msra.mxu0 %v3086_v12 }
 0xabb   :  { %2646 = vmatmul.mubr.msk.f32.vlgmr.msra.gmra.mxu1 %vm303_vm4, %v1251_v56  ;;  %2652 = vmatprep.subr.mxu0 %v2945_v8 }
 0xabc   :  { %2653 = vmatpush3.msra.mxu0 %v3095_v13  ;;  %2660 = vmatpush3.msra.mxu1 %v3077_v10 }
 0xabd   :  { %2654 = vmatprep.subr.mxu0 %v2945_v8  ;;  %2661 = vmatprep.subr.mxu1 %v2945_v8 }
 0xabe   :  { %2655 = vmatpush3.msra.mxu0 %v3112_v16  ;;  %2662 = vmatpush3.msra.mxu1 %v3102_v14 }
 0xabf   :  { %2663 = vmatprep.subr.mxu1 %v2945_v8  ;;  %2667 = vmatprep.mubr.msk.f32.mxu1 %vm2946_vm2, %v2945_v8 }
 0xac0   :  { %2664 = vmatpush3.msra.mxu1 %v3119_v17  ;;  %2670 = vmatprep.subr.mxu0 %v2945_v8 }
 0xac1   :  { %2665 = vmatprep.subr.mxu1 %v2945_v8 }
 0xac2   :  { %2666 = vmatpush3.msra.mxu1 %v3130_v18 }
 0xac3   :  { %2681 = vmatprep.subr.mxu1 %v2945_v8 }
 0xb77   :  { %v1216_v58 = vpop.f32.mrf.mxu0 }
 0xb78   :  { %v1227_v59 = vadd.f32 %v1216_v58, %v3185_v44  ;;  %v1220_v1 = vadd.f32 %v1216_v58, %v1144_v0 }
 0xb79   :  { %v2636_v60 = vpop.f32.mrf.mxu0 }
 0xb7a   :  { %1229 = vrot.lane.b32.xlu0 %v1227_v59, %s2947_s1  ;;  %v2381_v3 = vmul.f32 -1.442695, %v1220_v1 }
 0xb7b   :  { %v1320_v61 = vpop.f32.mrf.mxu1 }
 0xb7c   :  { %v1331_v62 = vadd.f32 %v1320_v61, %v3193_v57  ;;  %v1324_v4 = vadd.f32 %v1320_v61, %v1248_v2  ;;  %2823 = vpow2.f32 %v2381_v3 }
 0xb7d   :  { %v2647_v63 = vpop.f32.mrf.mxu1 }
 0xb7e   :  { %1333 = vrot.lane.b32.xlu1 %v1331_v62, %s2947_s1  ;;  %v2383_v5 = vmul.f32 -1.442695, %v1324_v4 }
 0xb80   :  { %2825 = vpow2.f32 %v2383_v5 }
 0xb89   :  { %v2824_v6 = vpop.eup %2823 }
 0xb8a   :  { %v1224_v7 = vadd.f32 1.0, %v2824_v6 }
 0xb8c   :  { %2827 = vrcp.f32 %v1224_v7 }
 0xb8d   :  { %v2826_v11 = vpop.eup %2825 }
 0xb8e   :  { %v1328_v15 = vadd.f32 1.0, %v2826_v11 }
 0xb90   :  { %2829 = vrcp.f32 %v1328_v15 }
 0xb99   :  { %v2828_v19 = vpop.eup %2827 }
 0xb9a   :  { %v1239_v31 = vsub.f32 1.0, %v2828_v19  ;;  %v1245_v33 = vmul.f32 %v2828_v19, %v3324_v49 }
 0xb9d   :  { %v2830_v22 = vpop.eup %2829 }
 0xb9e   :  { %v1343_v36 = vsub.f32 1.0, %v2830_v22  ;;  %v1349_v38 = vmul.f32 %v2830_v22, %v3329_v54 }
 0xbec   :  { %v1230_v20 = vpop.permute.xlu0 %1229 }
 0xbed   :  { %v1232_v21 = vmul.f32 %v2828_v19, %v1230_v20 }
 0xbef   :  { %1234 = vrot.lane.b32.xlu0 %v1232_v21, %s2947_s1  ;;  %v2873_v21 = vld [vmem:[%s3605_s27 + $0x18] sm:$0xff] }
 0xbf0   :  { %v1334_v23 = vpop.permute.xlu1 %1333 }
 0xbf1   :  { %v1336_v24 = vmul.f32 %v2830_v22, %v1334_v23  ;;  %v2874_v23 = vld [vmem:[%s3605_s27 + $0x10] sm:$0xff] }
 0xbf3   :  { %1338 = vrot.lane.b32.xlu1 %v1336_v24, %s2947_s1  ;;  %v2875_v24 = vld [vmem:[%s3605_s27 + $0x8] sm:$0xff] }
 0xc61   :  { %v1235_v25 = vpop.permute.xlu0 %1234 }
 0xc62   :  { %v1237_v26 = vadd.f32 %v1235_v25, %v1144_v0  ;;  %v2876_v25 = vld [vmem:[%s3584_s6 + $0x18] sm:$0xff] }
 0xc64   :  { %2831 = vtanh.f32 %v1237_v26  ;;  %v2877_v26 = vld [vmem:[%s3605_s27] sm:$0xff] }
 0xc65   :  { %v1339_v27 = vpop.permute.xlu1 %1338 }
 0xc66   :  { %v1341_v28 = vadd.f32 %v1339_v27, %v1248_v2  ;;  %v2878_v27 = vld [vmem:[%s3584_s6 + $0x10] sm:$0xff] }
 0xc68   :  { %2833 = vtanh.f32 %v1341_v28  ;;  %v2879_v28 = vld [vmem:[%s3584_s6 + $0x8] sm:$0xff] }
 0xc71   :  { %v2832_v29 = vpop.eup %2831 }
 0xc72   :  { %1241 = vrot.lane.b32.xlu0 %v2832_v29, %s2948_s3  ;;  %v2880_v29 = vld [vmem:[%s3584_s6] sm:$0xff] }
 0xc75   :  { %v2834_v30 = vpop.eup %2833 }
 0xc76   :  { %1345 = vrot.lane.b32.xlu1 %v2834_v30, %s2948_s3 }
 0xce4   :  { %v1242_v32 = vpop.permute.xlu0 %1241 }
 0xce5   :  { %v1244_v34 = vmul.f32 %v1242_v32, %v1239_v31 }
 0xce7   :  { %v3364_v35 = vadd.f32 %v1245_v33, %v1244_v34 }
 0xce8   :  { %v1346_v37 = vpop.permute.xlu1 %1345 }
 0xce9   :  { %v1348_v39 = vmul.f32 %v1346_v37, %v1343_v36  ;;  %1354 = vrot.lane.b32.xlu0 %v3364_v35, %s2948_s3  ;;  %v1560_v36 = vld [vmem:[#allocation2 + $0x30] sm:$0xff] }
 0xceb   :  { %v3369_v40 = vadd.f32 %v1349_v38, %v1348_v39  ;;  %v1664_v38 = vld [vmem:[#allocation3 + $0x8] sm:$0xff] }
 0xced   :  { %1458 = vrot.lane.b32.xlu1 %v3369_v40, %s2948_s3 }
 0xd5b   :  { %v1355_v41 = vpop.permute.xlu0 %1354 }
 0xd5c   :  { %2657 = vmatmul.mubr.msk.f32.vlgmr.msra.gmra.mxu0 %vm303_vm4, %v1355_v41 }
 0xd5d   :  { %2671 = vmatpush3.msra.mxu0 %v3071_v9  ;;  %2678 = vmatprep.mubr.msk.f32.mxu0 %vm2946_vm2, %v2945_v8 }
 0xd5e   :  { %2672 = vmatprep.subr.mxu0 %v2945_v8 }
 0xd5f   :  { %v1459_v42 = vpop.permute.xlu1 %1458  ;;  %2673 = vmatpush3.msra.mxu0 %v3086_v12 }
 0xd60   :  { %2668 = vmatmul.mubr.msk.f32.vlgmr.msra.gmra.mxu1 %vm303_vm4, %v1459_v42  ;;  %2674 = vmatprep.subr.mxu0 %v2945_v8 }
 0xd61   :  { %2675 = vmatpush3.msra.mxu0 %v3095_v13  ;;  %2682 = vmatpush3.msra.mxu1 %v3077_v10 }
 0xd62   :  { %2676 = vmatprep.subr.mxu0 %v2945_v8  ;;  %2683 = vmatprep.subr.mxu1 %v2945_v8 }
 0xd63   :  { %2677 = vmatpush3.msra.mxu0 %v3112_v16  ;;  %2684 = vmatpush3.msra.mxu1 %v3102_v14 }
 0xd64   :  { %2685 = vmatprep.subr.mxu1 %v2945_v8  ;;  %2689 = vmatprep.mubr.msk.f32.mxu1 %vm2946_vm2, %v2945_v8 }
 0xd65   :  { %2686 = vmatpush3.msra.mxu1 %v3119_v17  ;;  %2692 = vmatprep.subr.mxu0 %v2945_v8  ;;  %v1352_v17 = vld [vmem:[#allocation2 + $0x28] sm:$0xff] }
 0xd66   :  { %2687 = vmatprep.subr.mxu1 %v2945_v8 }
 0xd67   :  { %2688 = vmatpush3.msra.mxu1 %v3130_v18 }
 0xd68   :  { %2703 = vmatprep.subr.mxu1 %v2945_v8 }
 0xe1c   :  { %v1424_v9 = vpop.f32.mrf.mxu0 }
 0xe1d   :  { %v1435_v10 = vadd.f32 %v1424_v9, %v3185_v44  ;;  %v1428_v43 = vadd.f32 %v1424_v9, %v1352_v17 }
 0xe1e   :  { %v2658_v12 = vpop.f32.mrf.mxu0 }
 0xe1f   :  { %1437 = vrot.lane.b32.xlu0 %v1435_v10, %s2947_s1  ;;  %v2385_v46 = vmul.f32 -1.442695, %v1428_v43 }
 0xe20   :  { %v1528_v13 = vpop.f32.mrf.mxu1 }
 0xe21   :  { %v1539_v14 = vadd.f32 %v1528_v13, %v3193_v57  ;;  %v1532_v47 = vadd.f32 %v1528_v13, %v1456_v45  ;;  %2835 = vpow2.f32 %v2385_v46 }
 0xe22   :  { %v2669_v16 = vpop.f32.mrf.mxu1 }
 0xe23   :  { %1541 = vrot.lane.b32.xlu1 %v1539_v14, %s2947_s1  ;;  %v2387_v18 = vmul.f32 -1.442695, %v1532_v47 }
 0xe25   :  { %2837 = vpow2.f32 %v2387_v18 }
 0xe2e   :  { %v2836_v48 = vpop.eup %2835 }
 0xe2f   :  { %v1432_v49 = vadd.f32 1.0, %v2836_v48 }
 0xe31   :  { %2839 = vrcp.f32 %v1432_v49 }
 0xe32   :  { %v2838_v50 = vpop.eup %2837 }
 0xe33   :  { %v1536_v51 = vadd.f32 1.0, %v2838_v50 }
 0xe35   :  { %2841 = vrcp.f32 %v1536_v51 }
 0xe3e   :  { %v2840_v52 = vpop.eup %2839 }
 0xe3f   :  { %v1447_v1 = vsub.f32 1.0, %v2840_v52  ;;  %v1453_v3 = vmul.f32 %v2840_v52, %v3364_v35 }
 0xe42   :  { %v2842_v55 = vpop.eup %2841 }
 0xe43   :  { %v1551_v6 = vsub.f32 1.0, %v2842_v55  ;;  %v1557_v11 = vmul.f32 %v2842_v55, %v3369_v40 }
 0xe91   :  { %v1438_v53 = vpop.permute.xlu0 %1437 }
 0xe92   :  { %v1440_v54 = vmul.f32 %v2840_v52, %v1438_v53 }
 0xe94   :  { %1442 = vrot.lane.b32.xlu0 %v1440_v54, %s2947_s1 }
 0xe95   :  { %v1542_v56 = vpop.permute.xlu1 %1541 }
 0xe96   :  { %v1544_v58 = vmul.f32 %v2842_v55, %v1542_v56 }
 0xe98   :  { %1546 = vrot.lane.b32.xlu1 %v1544_v58, %s2947_s1 }
 0xf06   :  { %v1443_v59 = vpop.permute.xlu0 %1442 }
 0xf07   :  { %v1445_v60 = vadd.f32 %v1443_v59, %v1352_v17 }
 0xf09   :  { %2843 = vtanh.f32 %v1445_v60 }
 0xf0a   :  { %v1547_v61 = vpop.permute.xlu1 %1546 }
 0xf0b   :  { %v1549_v62 = vadd.f32 %v1547_v61, %v1456_v45 }
 0xf0d   :  { %2845 = vtanh.f32 %v1549_v62 }
 0xf16   :  { %v2844_v63 = vpop.eup %2843 }
 0xf17   :  { %1449 = vrot.lane.b32.xlu0 %v2844_v63, %s2948_s3 }
 0xf1a   :  { %v2846_v0 = vpop.eup %2845 }
 0xf1b   :  { %1553 = vrot.lane.b32.xlu1 %v2846_v0, %s2948_s3 }
 0xf89   :  { %v1450_v2 = vpop.permute.xlu0 %1449 }
 0xf8a   :  { %v1452_v4 = vmul.f32 %v1450_v2, %v1447_v1 }
 0xf8c   :  { %v3404_v5 = vadd.f32 %v1453_v3, %v1452_v4 }
 0xf8d   :  { %v1554_v7 = vpop.permute.xlu1 %1553 }
 0xf8e   :  { %v1556_v15 = vmul.f32 %v1554_v7, %v1551_v6  ;;  %1562 = vrot.lane.b32.xlu0 %v3404_v5, %s2948_s3  ;;  %v1768_v6 = vld [vmem:[#allocation2 + $0x38] sm:$0xff] }
 0xf90   :  { %v3409_v19 = vadd.f32 %v1557_v11, %v1556_v15  ;;  %v1871_v11 = vld [vmem:[#allocation3] sm:$0xff] }
 0xf92   :  { %1666 = vrot.lane.b32.xlu1 %v3409_v19, %s2948_s3 }
0x1000   :  { %v1563_v20 = vpop.permute.xlu0 %1562 }
0x1001   :  { %2679 = vmatmul.mubr.msk.f32.vlgmr.msra.gmra.mxu0 %vm303_vm4, %v1563_v20 }
0x1002   :  { %2693 = vmatpush3.msra.mxu0 %v2873_v21  ;;  %2700 = vmatprep.mubr.msk.f32.mxu0 %vm2946_vm2, %v2945_v8 }
0x1003   :  { %2694 = vmatprep.subr.mxu0 %v2945_v8 }
0x1004   :  { %v1667_v22 = vpop.permute.xlu1 %1666  ;;  %2695 = vmatpush3.msra.mxu0 %v2874_v23 }
0x1005   :  { %2690 = vmatmul.mubr.msk.f32.vlgmr.msra.gmra.mxu1 %vm303_vm4, %v1667_v22  ;;  %2696 = vmatprep.subr.mxu0 %v2945_v8 }
0x1006   :  { %2697 = vmatpush3.msra.mxu0 %v2875_v24  ;;  %2704 = vmatpush3.msra.mxu1 %v2876_v25 }
0x1007   :  { %2698 = vmatprep.subr.mxu0 %v2945_v8  ;;  %2705 = vmatprep.subr.mxu1 %v2945_v8 }
0x1008   :  { %2699 = vmatpush3.msra.mxu0 %v2877_v26  ;;  %2706 = vmatpush3.msra.mxu1 %v2878_v27 }
0x1009   :  { %2707 = vmatprep.subr.mxu1 %v2945_v8  ;;  %2711 = vmatprep.mubr.msk.f32.mxu1 %vm2946_vm2, %v2945_v8 }
0x100a   :  { %2708 = vmatpush3.msra.mxu1 %v2879_v28  ;;  %2714 = vmatprep.subr.mxu0 %v2945_v8 }
0x100b   :  { %2709 = vmatprep.subr.mxu1 %v2945_v8 }
0x100c   :  { %2710 = vmatpush3.msra.mxu1 %v2880_v29 }
0x100d   :  { %2725 = vmatprep.subr.mxu1 %v2945_v8 }
0x10c1   :  { %v1632_v30 = vpop.f32.mrf.mxu0 }
0x10c2   :  { %v1643_v31 = vadd.f32 %v1632_v30, %v3185_v44  ;;  %v1636_v37 = vadd.f32 %v1632_v30, %v1560_v36 }
0x10c3   :  { %v2680_v32 = vpop.f32.mrf.mxu0 }
0x10c4   :  { %1645 = vrot.lane.b32.xlu0 %v1643_v31, %s2947_s1  ;;  %v2389_v39 = vmul.f32 -1.442695, %v1636_v37  ;;  %v1975_v37 = vld [vmem:[%s3587_s9 + $0x8] sm:$0xff] }
0x10c5   :  { %v1736_v33 = vpop.f32.mrf.mxu1 }
0x10c6   :  { %v1747_v34 = vadd.f32 %v1736_v33, %v3193_v57  ;;  %v1740_v40 = vadd.f32 %v1736_v33, %v1664_v38  ;;  %2847 = vpow2.f32 %v2389_v39  ;;  %v1977_v33 = vld [vmem:[%s3587_s9 + $0x18] sm:$0xff]  ;;  %v1974_v39 = vld [vmem:[%s3587_s9] sm:$0xff] }
0x10c7   :  { %v2691_v35 = vpop.f32.mrf.mxu1 }
0x10c8   :  { %1749 = vrot.lane.b32.xlu1 %v1747_v34, %s2947_s1  ;;  %v2391_v41 = vmul.f32 -1.442695, %v1740_v40  ;;  %v1976_v34 = vld [vmem:[%s3587_s9 + $0x10] sm:$0xff]  ;;  %v1981_v35 = vld [vmem:[%s3588_s10 + $0x18] sm:$0xff] }
0x10ca   :  { %2849 = vpow2.f32 %v2391_v41  ;;  %v1979_v41 = vld [vmem:[%s3588_s10 + $0x8] sm:$0xff] }
0x10d3   :  { %v2848_v42 = vpop.eup %2847 }
0x10d4   :  { %v1640_v9 = vadd.f32 1.0, %v2848_v42  ;;  %v1978_v42 = vld [vmem:[%s3588_s10] sm:$0xff] }
0x10d6   :  { %2851 = vrcp.f32 %v1640_v9 }
0x10d7   :  { %v2850_v10 = vpop.eup %2849 }
0x10d8   :  { %v1744_v12 = vadd.f32 1.0, %v2850_v10 }
0x10da   :  { %2853 = vrcp.f32 %v1744_v12 }
0x10e3   :  { %v2852_v13 = vpop.eup %2851 }
0x10e4   :  { %v1655_v51 = vsub.f32 1.0, %v2852_v13  ;;  %v1661_v53 = vmul.f32 %v2852_v13, %v3404_v5 }
0x10e7   :  { %v2854_v17 = vpop.eup %2853 }
0x10e8   :  { %v1759_v56 = vsub.f32 1.0, %v2854_v17  ;;  %v1765_v59 = vmul.f32 %v2854_v17, %v3409_v19 }
0x1136   :  { %v1646_v14 = vpop.permute.xlu0 %1645 }
0x1137   :  { %v1648_v16 = vmul.f32 %v2852_v13, %v1646_v14 }
0x1139   :  { %1650 = vrot.lane.b32.xlu0 %v1648_v16, %s2947_s1 }
0x113a   :  { %v1750_v43 = vpop.permute.xlu1 %1749 }
0x113b   :  { %v1752_v45 = vmul.f32 %v2854_v17, %v1750_v43 }
0x113d   :  { %1754 = vrot.lane.b32.xlu1 %v1752_v45, %s2947_s1 }
0x11ab   :  { %v1651_v46 = vpop.permute.xlu0 %1650 }
0x11ac   :  { %v1653_v47 = vadd.f32 %v1651_v46, %v1560_v36  ;;  %v1980_v36 = vld [vmem:[%s3588_s10 + $0x10] sm:$0xff] }
0x11ae   :  { %2855 = vtanh.f32 %v1653_v47  ;;  %v2143_v47 = vld [vmem:[%s3590_s12 + $0x18] sm:$0xff] }
0x11af   :  { %v1755_v18 = vpop.permute.xlu1 %1754 }
0x11b0   :  { %v1757_v48 = vadd.f32 %v1755_v18, %v1664_v38 }
0x11b2   :  { %2857 = vtanh.f32 %v1757_v48  ;;  %v2142_v48 = vld [vmem:[%s3590_s12 + $0x10] sm:$0xff] }
0x11bb   :  { %v2856_v49 = vpop.eup %2855 }
0x11bc   :  { %1657 = vrot.lane.b32.xlu0 %v2856_v49, %s2948_s3  ;;  %v2147_v49 = vld [vmem:[%s3591_s13 + $0x18] sm:$0xff] }
0x11bf   :  { %v2858_v50 = vpop.eup %2857 }
0x11c0   :  { %1761 = vrot.lane.b32.xlu1 %v2858_v50, %s2948_s3  ;;  %v2141_v50 = vld [vmem:[%s3590_s12 + $0x8] sm:$0xff] }
0x122e   :  { %v1658_v52 = vpop.permute.xlu0 %1657 }
0x122f   :  { %v1660_v54 = vmul.f32 %v1658_v52, %v1655_v51  ;;  %v2146_v52 = vld [vmem:[%s3591_s13 + $0x10] sm:$0xff] }
0x1231   :  { %v3460_v55 = vadd.f32 %v1661_v53, %v1660_v54  ;;  %v2140_v53 = vld [vmem:[%s3590_s12] sm:$0xff]  ;;  %v2145_v54 = vld [vmem:[%s3591_s13 + $0x8] sm:$0xff] }
0x1232   :  { %v1762_v58 = vpop.permute.xlu1 %1761 }
0x1233   :  { %v1764_v60 = vmul.f32 %v1762_v58, %v1759_v56  ;;  %1770 = vrot.lane.b32.xlu0 %v3460_v55, %s2948_s3 }
0x1235   :  { %v3465_v61 = vadd.f32 %v1765_v59, %v1764_v60  ;;  %v2398_v60 = vld [vmem:[%s3589_s11] ss:$0 sm:$0xff] }
0x1237   :  { %1873 = vrot.lane.b32.xlu1 %v3465_v61, %s2948_s3 }
0x12a5   :  { %v1771_v62 = vpop.permute.xlu0 %1770 }
0x12a6   :  { %2701 = vmatmul.mubr.msk.f32.vlgmr.msra.gmra.mxu0 %vm303_vm4, %v1771_v62 }
0x12a7   :  { %2722 = vmatprep.mubr.msk.f32.mxu0 %vm2946_vm2, %v2945_v8  ;;  %2715 = vmatpush3.msra.mxu0 %v1981_v35 }
0x12a8   :  { %2716 = vmatprep.subr.mxu0 %v2945_v8 }
0x12a9   :  { %v1874_v63 = vpop.permute.xlu1 %1873  ;;  %2717 = vmatpush3.msra.mxu0 %v1980_v36 }
0x12aa   :  { %2712 = vmatmul.mubr.msk.f32.vlgmr.msra.gmra.mxu1 %vm303_vm4, %v1874_v63  ;;  %2718 = vmatprep.subr.mxu0 %v2945_v8 }
0x12ab   :  { %2733 = vmatprep.mubr.msk.f32.mxu1 %vm2946_vm2, %v2945_v8  ;;  %2726 = vmatpush3.msra.mxu1 %v1977_v33 }
0x12ac   :  { %2727 = vmatprep.subr.mxu1 %v2945_v8  ;;  %2719 = vmatpush3.msra.mxu0 %v1979_v41 }
0x12ad   :  { %2728 = vmatpush3.msra.mxu1 %v1976_v34  ;;  %2720 = vmatprep.subr.mxu0 %v2945_v8 }
0x12ae   :  { %2729 = vmatprep.subr.mxu1 %v2945_v8  ;;  %2721 = vmatpush3.msra.mxu0 %v1978_v42 }
0x12af   :  { %2730 = vmatpush3.msra.mxu1 %v1975_v37  ;;  %2736 = vmatprep.subr.mxu0 %v2945_v8 }
0x12b0   :  { %2731 = vmatprep.subr.mxu1 %v2945_v8 }
0x12b1   :  { %2732 = vmatpush3.msra.mxu1 %v1974_v39 }
0x12b2   :  { %2747 = vmatprep.subr.mxu1 %v2945_v8 }
0x1366   :  { %v1840_v0 = vpop.f32.mrf.mxu0 }
0x1367   :  { %v1851_v1 = vadd.f32 %v1840_v0, %v3185_v44  ;;  %v1844_v7 = vadd.f32 %v1840_v0, %v1768_v6 }
0x1368   :  { %v2702_v2 = vpop.f32.mrf.mxu0 }
0x1369   :  { %1853 = vrot.lane.b32.xlu0 %v1851_v1, %s2947_s1  ;;  %v2393_v15 = vmul.f32 -1.442695, %v1844_v7 }
0x136a   :  { %v1943_v3 = vpop.f32.mrf.mxu1 }
0x136b   :  { %v1954_v4 = vadd.f32 %v1943_v3, %v3193_v57  ;;  %v1947_v19 = vadd.f32 %v1943_v3, %v1871_v11  ;;  %2859 = vpow2.f32 %v2393_v15 }
0x136c   :  { %v2713_v5 = vpop.f32.mrf.mxu1 }
0x136d   :  { %1956 = vrot.lane.b32.xlu1 %v1954_v4, %s2947_s1  ;;  %v2395_v20 = vmul.f32 -1.442695, %v1947_v19 }
0x136f   :  { %2861 = vpow2.f32 %v2395_v20 }
0x1378   :  { %v2860_v21 = vpop.eup %2859 }
0x1379   :  { %v1848_v22 = vadd.f32 1.0, %v2860_v21 }
0x137b   :  { %2863 = vrcp.f32 %v1848_v22 }
0x137c   :  { %v2862_v44 = vpop.eup %2861 }
0x137d   :  { %v1951_v23 = vadd.f32 1.0, %v2862_v44 }
0x137f   :  { %2865 = vrcp.f32 %v1951_v23 }
0x1388   :  { %v2864_v24 = vpop.eup %2863 }
0x1389   :  { %v1863_v9 = vsub.f32 1.0, %v2864_v24  ;;  %v1869_v12 = vmul.f32 %v2864_v24, %v3460_v55  ;;  %v2144_v55 = vld [vmem:[%s3591_s13] sm:$0xff]  ;;  %s2881_s13 = scalar_lea.vmem %s2312_s23, 128 }
0x138a   :  { %p2882_p0 = scmp.ne.s32.totalorder %s2312_s23, %s2881_s13  ;;  %p2887_p2 = scmp.lt.s32.totalorder %s2881_s13, %s2881_s13 }
0x138c   :  { %v2866_v26 = vpop.eup %2865  ;;  %p2888_p3 = por %p2887_p2, %p2886_p1 }
0x138d   :  { %v1966_v16 = vsub.f32 1.0, %v2866_v26  ;;  %v1972_v43 = vmul.f32 %v2866_v26, %v3465_v61 }
0x138e   :  { %p2889_p4 = pnand %p2888_p3, %p2882_p0 }
0x13db   :  { %v1854_v25 = vpop.permute.xlu0 %1853 }
0x13dc   :  { %v1856_v57 = vmul.f32 %v2864_v24, %v1854_v25 }
0x13de   :  { %1858 = vrot.lane.b32.xlu0 %v1856_v57, %s2947_s1 }
0x13df   :  { %v1957_v27 = vpop.permute.xlu1 %1956 }
0x13e0   :  { %v1959_v28 = vmul.f32 %v2866_v26, %v1957_v27 }
0x13e2   :  { %1961 = vrot.lane.b32.xlu1 %v1959_v28, %s2947_s1 }
0x1450   :  { %v1859_v29 = vpop.permute.xlu0 %1858 }
0x1451   :  { %v1861_v30 = vadd.f32 %v1859_v29, %v1768_v6 }
0x1453   :  { %2867 = vtanh.f32 %v1861_v30 }
0x1454   :  { %v1962_v31 = vpop.permute.xlu1 %1961 }
0x1455   :  { %v1964_v32 = vadd.f32 %v1962_v31, %v1871_v11 }
0x1457   :  { %2869 = vtanh.f32 %v1964_v32 }
0x1460   :  { %v2868_v38 = vpop.eup %2867 }
0x1461   :  { %1865 = vrot.lane.b32.xlu0 %v2868_v38, %s2948_s3 }
0x1464   :  { %v2870_v40 = vpop.eup %2869 }
0x1465   :  { %1968 = vrot.lane.b32.xlu1 %v2870_v40, %s2948_s3 }
0x14d3   :  { %v1866_v10 = vpop.permute.xlu0 %1865 }
0x14d4   :  { %v1868_v13 = vmul.f32 %v1866_v10, %v1863_v9 }
0x14d6   :  { %v1870_v14 = vadd.f32 %v1869_v12, %v1868_v13 }
0x14d7   :  { %v1969_v17 = vpop.permute.xlu1 %1968 }
0x14d8   :  { %v1971_v45 = vmul.f32 %v1969_v17, %v1966_v16  ;;  %2058 = vrot.lane.b32.xlu1 %v1870_v14, %s2948_s3 }
0x14da   :  { %v1973_v46 = vadd.f32 %v1972_v43, %v1971_v45 }
0x14dc   :  { %1983 = vrot.lane.b32.xlu0 %v1973_v46, %s2948_s3 }
0x154a   :  { %v2059_v18 = vpop.permute.xlu1 %2058 }
0x154b   :  { %2734 = vmatmul.mubr.msk.f32.vlgmr.msra.gmra.mxu1 %vm303_vm4, %v2059_v18 }
0x154c   :  { %2748 = vmatpush3.msra.mxu1 %v2143_v47  ;;  %2755 = vmatprep.mubr.msk.f32.mxu1 %vm2946_vm2, %v2945_v8 }
0x154d   :  { %2749 = vmatprep.subr.mxu1 %v2945_v8 }
0x154e   :  { %2750 = vmatpush3.msra.mxu1 %v2142_v48  ;;  %v1984_v51 = vpop.permute.xlu0 %1983 }
0x154f   :  { %2751 = vmatprep.subr.mxu1 %v2945_v8  ;;  %2723 = vmatmul.mubr.msk.f32.vlgmr.msra.gmra.mxu0 %vm303_vm4, %v1984_v51 }
0x1550   :  { %2737 = vmatpush3.msra.mxu0 %v2147_v49  ;;  %2752 = vmatpush3.msra.mxu1 %v2141_v50 }
0x1551   :  { %2738 = vmatprep.subr.mxu0 %v2945_v8  ;;  %2753 = vmatprep.subr.mxu1 %v2945_v8 }
0x1552   :  { %2739 = vmatpush3.msra.mxu0 %v2146_v52  ;;  %2754 = vmatpush3.msra.mxu1 %v2140_v53 }
0x1553   :  { %2740 = vmatprep.subr.mxu0 %v2945_v8  ;;  %2756 = vmatmul.mubr.msk.f32.vlgmr.msra.gmra.mxu1 %vm303_vm4, %v2059_v18 }
0x1554   :  { %2741 = vmatpush3.msra.mxu0 %v2145_v54  ;;  %2744 = vmatprep.mubr.msk.f32.mxu0 %vm2946_vm2, %v2945_v8 }
0x1555   :  { %2742 = vmatprep.subr.mxu0 %v2945_v8 }
0x1556   :  { %2743 = vmatpush3.msra.mxu0 %v2144_v55 }
0x1557   :  { %2745 = vmatmul.mubr.msk.f32.vlgmr.msra.gmra.mxu0 %vm303_vm4, %v1984_v51 }
0x160b   :  { %v2128_v56 = vpop.f32.mrf.mxu1 }
0x160d   :  { %v2735_v58 = vpop.f32.mrf.mxu1 }
0x160f   :  { %v2053_v59 = vpop.f32.mrf.mxu0 }
0x1610   :  { %v2129_v61 = vadd.f32 %v2128_v56, %v2053_v59 }
0x1611   :  { %v2724_v62 = vpop.f32.mrf.mxu0 }
0x1612   :  { %v2139_v63 = vadd.f32 %v2398_v60, %v2129_v61 }
0x1613   :  { %v2284_v0 = vpop.f32.mrf.mxu1 }
0x1614   :  { %2299 = vst.msk [vmem:[#allocation4] sm:$0xff] %vm2298_vm5, %v2139_v63 }
0x1615   :  { %v2757_v8 = vpop.f32.mrf.mxu1 }
0x1616   :  { %2892 = shalt.err (!%p2889_p4)
}
0x1617   :  { %2314 = dma.vmem_to_hbm [thread:$0]  %s2312_s23, 128, %s3594_s16, [#allocation5]   ;;  %v2214_v1 = vpop.f32.mrf.mxu0  ;;  %v2401_v2 = vld [vmem:[%s3592_s14] ss:$0 sm:$0xff] }
0x1618   :  { %v2285_v3 = vadd.f32 %v2284_v0, %v2214_v1  ;;  %s2950_s19 = smov [#allocation6]   ;;  %v2301_v7 = vld [vmem:[%s3593_s15] sm:$0xff]  ;;  %s2951_s4 = smov [#allocation8]  }
0x1619   :  { %v2746_v4 = vpop.f32.mrf.mxu0  ;;  %s2321_s10 = sshll.u32 %s2950_s19, 4  ;;  %s2331_s16 = sshll.u32 %s2951_s4, 4  ;;  %s2322_s10 = int_to_ptr.vmem [resolvable:$true] %s2321_s10  ;;  %s2332_s16 = int_to_ptr.vmem [resolvable:$true] %s2331_s16 }
0x161a   :  { %v2295_v5 = vadd.f32 %v2401_v2, %v2285_v3  ;;  %s2901_s27 = scalar_lea.vmem %s2322_s10, 128  ;;  %p2906_p6 = scmp.lt.s32.totalorder %s2322_s10, %s2322_s10 }
0x161b   :  { %p2902_p5 = scmp.ne.s32.totalorder %s2322_s10, %s2901_s27  ;;  %p2907_p7 = scmp.lt.s32.totalorder %s2901_s27, %s2901_s27 }
0x161c   :  { %v2296_v6 = vmul.f32 1.442695, %v2295_v5 }
0x161d   :  { %p2908_p8 = por %p2907_p7, %p2906_p6 }
0x161e   :  { %2871 = vpow2.f32 %v2296_v6 }
0x161f   :  { %p2909_p9 = pnand %p2908_p8, %p2902_p5 }
0x162b   :  { %v2872_v11 = vpop.eup %2871 }
0x162c   :  { %2300 = vst.msk [vmem:[#allocation6] sm:$0xff] %vm2298_vm5, %v2872_v11  ;;  %v2302_v15 = vmul.f32 %v2872_v11, %v2301_v7 }
0x162d   :  { %2912 = shalt.err (!%p2909_p9)
}
0x162e   :  { %2324 = dma.vmem_to_hbm [thread:$0]  %s2322_s10, 128, %s3595_s17, [#allocation7]   ;;  %v2303_v19 = vadd.f32 %v2302_v15, %v2139_v63 }
0x162f   :  { %s2921_s15 = scalar_lea.vmem %s2332_s16, 128  ;;  %p2926_p11 = scmp.lt.s32.totalorder %s2332_s16, %s2332_s16 }
0x1630   :  { %2304 = vst.msk [vmem:[#allocation8] sm:$0xff] %vm2298_vm5, %v2303_v19  ;;  %p2922_p10 = scmp.ne.s32.totalorder %s2332_s16, %s2921_s15  ;;  %p2927_p12 = scmp.lt.s32.totalorder %s2921_s15, %s2921_s15 }
0x1632   :  { %p2928_p13 = por %p2927_p12, %p2926_p11 }
0x1634   :  { %p2929_p0 = pnand %p2928_p13, %p2922_p10 }
0x1636   :  { %2932 = shalt.err (!%p2929_p0)
}
0x1637   :  { %2334 = dma.vmem_to_hbm [thread:$0]  %s2332_s16, 128, %s3596_s18, [#allocation7]  }
0x1638   :  { %2941 = dma.done.wait [#allocation5], 128  }
0x1639   :  { %2942 = vsyncadd [#allocation5], 4294967168 }
0x163a   :  { %2943 = dma.done.wait [#allocation7], 256  }
0x163b   :  { %2944 = vsyncadd [#allocation7], 4294967040 }
0x163c   :  { %2344 = vsyncpa [#allocation5], 1 }
0x163d   :  { %2345 = vsyncpa [#allocation7], 1 }

</bundles_post_ra>
